<compile_context>
chip_gen: v7x
topology: tpu7x:2x2x1
jax: 0.10.0
libtpu: 0.0.40
codegen_flags: <defaults>
</compile_context>

<pallas_src>
import functools

import numpy as np
import jax
import jax.numpy as jnp
from jax import lax
from jax.experimental import pallas as pl
from jax.experimental.pallas import tpu as pltpu


MATMUL_DTYPE = jnp.bfloat16  # MXU operand / inter-layer activation dtype.


# ---------------------------------------------------------------------------
# Planning helpers (VMEM budget, time chunking, unroll factor).
# ---------------------------------------------------------------------------
def _vmem_limit_bytes():
    """Conservative per-core VMEM limit derived from the actual chip."""
    cap = 64 * 1024 * 1024  # fallback: assume v7x (smallest physical VMEM)
    try:
        info = pltpu.get_tpu_info()
        cap = int(getattr(info, "vmem_capacity_bytes", cap))
    except Exception:
        pass
    return int(min(0.85 * cap, 100 * 1024 * 1024))


def _plan_time_chunks(seq_len, bs_rows, max_in_dim, hidden, vmem_limit,
                      max_tc=512):
    """Pick the time-chunk size so the double-buffered pipeline fits VMEM.

    Returns (tc, n_chunks, padded_seq_len)."""
    G = 4 * hidden
    a = np.dtype(MATMUL_DTYPE).itemsize
    # Per-timestep VMEM: double-buffered x chunk + double-buffered seq output
    # chunk + the fused f32 pre-gate scratch row.
    per_step = bs_rows * (2 * max_in_dim * a + 2 * hidden * a + G * 4)
    fixed = (2 * (max_in_dim + hidden) * G * a  # double-buffered weights
             + 2 * G * 4                        # bias
             + 2 * bs_rows * hidden * 4         # h/c carries
             + (2 << 20))                       # compiler-internal slack
    budget = int(0.7 * vmem_limit) - fixed
    tc_cap = int(max(1, min(budget // max(per_step, 1), max_tc)))
    tc_cap = max(1, min(tc_cap, seq_len))
    n_chunks = -(-seq_len // tc_cap)   # cdiv
    tc = -(-seq_len // n_chunks)       # balance chunk sizes (minimizes padding)
    return tc, n_chunks, tc * n_chunks


def _pick_unroll(tc, bs_rows, hidden, vreg_budget_bytes=96 * 1024):
    """Unroll the timestep loop as far as the live gate registers allow."""
    per_step = max(1, bs_rows * 4 * hidden * 4)  # f32 gates per unrolled step
    desired = min(tc, max(2, vreg_budget_bytes // per_step))
    desired = max(1, desired)
    for d in range(desired, 0, -1):
        if tc % d == 0:
            return d
    return 1


# ---------------------------------------------------------------------------
# Fused LSTM layer kernel.
#   Per grid step (one time chunk, one batch shard):
#     1. pre = x_chunk @ W_ih^T + (b_ih + b_hh)   -- big MXU matmul -> VMEM
#     2. tc recurrent steps (small h @ W_hh^T matmul + gate math), h/c carried
#        in VMEM scratch across the sequential ("arbitrary") time axis.
#     3. Either emit the hidden sequence (intermediate layers, bf16) or, on the
#        last chunk of the last layer, the fused Linear head output.
# ---------------------------------------------------------------------------
def _lstm_layer_kernel(x_ref, w_ih_ref, w_hh_ref, b_ref, *rest,
                       emit_sequence, fuse_head, seq_len, needs_mask, unroll):
    if fuse_head:
        w_lin_ref, b_lin_ref, out_ref, pre_scr, h_scr, c_scr = rest
    else:
        w_lin_ref = b_lin_ref = None
        out_ref, pre_scr, h_scr, c_scr = rest

    chunk = pl.program_id(1)            # time axis (innermost, sequential)
    n_chunks = pl.num_programs(1)

    @pl.when(chunk == 0)
    def _():
        h_scr[...] = jnp.zeros_like(h_scr)   # PyTorch default h0 = c0 = 0
        c_scr[...] = jnp.zeros_like(c_scr)

    tc, rows_b, in_dim = x_ref.shape
    H = h_scr.shape[-1]

    # --- fused, chunk-parallel input projection (no HBM round trip) ----------
    x2 = x_ref[...].reshape(tc * rows_b, in_dim)          # bf16
    pre = jnp.dot(x2, w_ih_ref[...],
                  preferred_element_type=jnp.float32) + b_ref[...]
    pre_scr[...] = pre.reshape(tc, rows_b, 4 * H)

    # --- recurrence: only the small h @ W_hh^T matmul stays on the serial path
    def step(s, carry):
        h_prev, c_prev = carry
        gates = pre_scr[s] + jnp.dot(
            h_prev.astype(w_hh_ref.dtype), w_hh_ref[...],
            preferred_element_type=jnp.float32)
        # NOTE: for H % 128 == 0 these per-gate slices are whole lane tiles
        # (free); for small H they cost a few lane shifts per step.
        i_g = jax.nn.sigmoid(gates[:, 0 * H:1 * H])
        f_g = jax.nn.sigmoid(gates[:, 1 * H:2 * H])
        g_g = jnp.tanh(gates[:, 2 * H:3 * H])
        o_g = jax.nn.sigmoid(gates[:, 3 * H:4 * H])
        c_new = f_g * c_prev + i_g * g_g
        h_new = o_g * jnp.tanh(c_new)
        if needs_mask:
            valid = (chunk * tc + s) < seq_len   # padded tail steps are no-ops
            h_new = jnp.where(valid, h_new, h_prev)
            c_new = jnp.where(valid, c_new, c_prev)
        if emit_sequence:
            out_ref[s] = h_new.astype(out_ref.dtype)
        return h_new, c_new

    h_fin, c_fin = lax.fori_loop(0, tc, step, (h_scr[...], c_scr[...]),
                                 unroll=unroll)
    h_scr[...] = h_fin
    c_scr[...] = c_fin

    if not emit_sequence:
        # Output block is grid-resident along the time axis; only the final
        # chunk's value matters (== hn[-1]); the Linear head is fused here.
        @pl.when(chunk == n_chunks - 1)
        def _():
            if fuse_head:
                y = jnp.dot(h_fin.astype(w_lin_ref.dtype), w_lin_ref[...],
                            preferred_element_type=jnp.float32) + b_lin_ref[...]
                out_ref[...] = y.astype(out_ref.dtype)
            else:
                out_ref[...] = h_fin.astype(out_ref.dtype)


def lstm_layer(x_tm, w_ih_t, w_hh_t, bias, *, seq_len, tc, batch_split,
               emit_sequence, head, out_dtype, vmem_limit):
    """x_tm: (S_pad, B, in) time-major bf16.

    Returns (S_pad, B, H) bf16 hidden sequence, or (B, O)/(B, H) for the last
    layer (with / without fused Linear head)."""
    S_pad, B, I = x_tm.shape
    H = w_hh_t.shape[0]
    G = 4 * H
    Bs = B // batch_split
    n_chunks = S_pad // tc
    needs_mask = (S_pad != seq_len)
    unroll = _pick_unroll(tc, Bs, H)
    fuse_head = head is not None

    in_specs = [
        pl.BlockSpec((tc, Bs, I), lambda b, c: (c, b, 0)),
        pl.BlockSpec((I, G), lambda b, c: (0, 0)),
        pl.BlockSpec((H, G), lambda b, c: (0, 0)),
        pl.BlockSpec((1, G), lambda b, c: (0, 0)),
    ]
    args = [x_tm, w_ih_t, w_hh_t, bias]
    if fuse_head:
        w_lin_t, b_lin = head
        O = w_lin_t.shape[1]
        in_specs += [pl.BlockSpec((H, O), lambda b, c: (0, 0)),
                     pl.BlockSpec((1, O), lambda b, c: (0, 0))]
        args += [w_lin_t, b_lin]

    if emit_sequence:
        out_shape = jax.ShapeDtypeStruct((S_pad, B, H), out_dtype)
        out_spec = pl.BlockSpec((tc, Bs, H), lambda b, c: (c, b, 0))
        out_bytes = S_pad * B * H * np.dtype(out_dtype).itemsize
    else:
        out_dim = w_lin_t.shape[1] if fuse_head else H
        out_shape = jax.ShapeDtypeStruct((B, out_dim), out_dtype)
        out_spec = pl.BlockSpec((Bs, out_dim), lambda b, c: (b, 0))
        out_bytes = B * out_dim * np.dtype(out_dtype).itemsize

    a = np.dtype(MATMUL_DTYPE).itemsize
    cost = pl.CostEstimate(
        flops=2 * S_pad * B * G * (I + H) + 10 * S_pad * B * H
              + (2 * B * H * w_lin_t.shape[1] if fuse_head else 0),
        transcendentals=5 * S_pad * B * H,
        bytes_accessed=(x_tm.size * a + (I + H) * G * a + G * 4 + out_bytes),
    )

    kernel = functools.partial(
        _lstm_layer_kernel,
        emit_sequence=emit_sequence, fuse_head=fuse_head,
        seq_len=seq_len, needs_mask=needs_mask, unroll=unroll)

    return pl.pallas_call(
        kernel,
        out_shape=out_shape,
        grid_spec=pltpu.PrefetchScalarGridSpec(
            num_scalar_prefetch=0,
            grid=(batch_split, n_chunks),
            in_specs=in_specs,
            out_specs=out_spec,
            scratch_shapes=[
                pltpu.VMEM((tc, Bs, G), jnp.float32),  # fused pre-gates (VMEM only)
                pltpu.VMEM((Bs, H), jnp.float32),      # h carry
                pltpu.VMEM((Bs, H), jnp.float32),      # c carry
            ],
        ),
        compiler_params=pltpu.CompilerParams(
            dimension_semantics=("parallel", "arbitrary"),
            vmem_limit_bytes=vmem_limit),
        cost_estimate=cost,
    )(*args)


# ---------------------------------------------------------------------------
# Full RNNModel forward.
# ---------------------------------------------------------------------------
def rnn_model_forward(x, params):
    """x: (B, S, input_size) batch_first, exactly like the PyTorch module."""
    B, S, I = x.shape
    lstm_params = params["lstm"]
    num_layers = len(lstm_params)
    H = lstm_params[0]["w_hh_t"].shape[0]

    # Split the batch across the two TensorCores (v7x) when it is big enough to
    # keep each shard's blocks sublane-aligned; harmless (size-1 axis) otherwise.
    batch_split = 2 if (B % 16 == 0) else 1
    Bs = B // batch_split

    vmem_limit = _vmem_limit_bytes()
    tc, n_chunks, S_pad = _plan_time_chunks(S, Bs, max(I, H), H, vmem_limit)

    # One tiny transpose + bf16 cast of the smallest tensor; everything
    # downstream stays time-major bf16 so no further layout changes occur.
    h_seq = jnp.transpose(x, (1, 0, 2)).astype(MATMUL_DTYPE)  # (S, B, I)
    if S_pad != S:
        h_seq = jnp.pad(h_seq, ((0, S_pad - S), (0, 0), (0, 0)))

    out = None
    for li, lp in enumerate(lstm_params):
        last = li == num_layers - 1
        res = lstm_layer(
            h_seq, lp["w_ih_t"], lp["w_hh_t"], lp["b"],
            seq_len=S, tc=tc, batch_split=batch_split,
            emit_sequence=not last,
            head=(params["w_lin_t"], params["b_lin"]) if last else None,
            out_dtype=jnp.float32 if last else MATMUL_DTYPE,
            vmem_limit=vmem_limit)
        if last:
            out = res                       # (B, O) — hn[-1] @ W_lin^T + b_lin
        else:
            h_seq = res                     # (S_pad, B, H) bf16
        # TODO(synk): nn.LSTM inter-layer dropout is a training-time op; the
        # eval forward pass skips it (matches model.eval() behaviour).
    return out


# ---------------------------------------------------------------------------
# Parameter init (PyTorch-style uniform(-1/sqrt(H), 1/sqrt(H))) + kernel prep.
# ---------------------------------------------------------------------------
def init_raw_params(key, input_size, hidden_size, num_layers, output_size):
    k = hidden_size ** -0.5
    lstm = []
    for layer in range(num_layers):
        in_dim = input_size if layer == 0 else hidden_size
        key, k1, k2, k3, k4 = jax.random.split(key, 5)
        w_ih = jax.random.uniform(k1, (4 * hidden_size, in_dim), jnp.float32, -k, k)
        w_hh = jax.random.uniform(k2, (4 * hidden_size, hidden_size), jnp.float32, -k, k)
        b_ih = jax.random.uniform(k3, (4 * hidden_size,), jnp.float32, -k, k)
        b_hh = jax.random.uniform(k4, (4 * hidden_size,), jnp.float32, -k, k)
        lstm.append({"w_ih": w_ih, "w_hh": w_hh, "b": (b_ih + b_hh).reshape(1, -1)})
    key, k5, k6 = jax.random.split(key, 3)
    w_lin = jax.random.uniform(k5, (output_size, hidden_size), jnp.float32, -k, k)
    b_lin = jax.random.uniform(k6, (1, output_size), jnp.float32, -k, k)
    return {"lstm": lstm, "w_lin": w_lin, "b_lin": b_lin}


def prepare_params(raw, matmul_dtype=MATMUL_DTYPE):
    """Pre-transpose (and bf16-cast) weights once so kernels do no in-kernel .T."""
    lstm = [
        {
            "w_ih_t": lp["w_ih"].T.astype(matmul_dtype),  # (in, 4H)
            "w_hh_t": lp["w_hh"].T.astype(matmul_dtype),  # (H, 4H)
            "b": lp["b"],                                 # (1, 4H) f32
        }
        for lp in raw["lstm"]
    ]
    return {
        "lstm": lstm,
        "w_lin_t": raw["w_lin"].T.astype(matmul_dtype),   # (H, O)
        "b_lin": raw["b_lin"],                            # (1, O) f32
    }


def _reference_forward(x, raw):
    """Pure-JAX f32 reference mirroring torch.nn.LSTM + Linear."""
    B, S, _ = x.shape
    h_seq = x.astype(jnp.float32)
    for lp in raw["lstm"]:
        H = lp["w_hh"].shape[1]
        h = jnp.zeros((B, H), jnp.float32)
        c = jnp.zeros((B, H), jnp.float32)
        outs = []
        for t in range(S):
            gates = h_seq[:, t, :] @ lp["w_ih"].T + h @ lp["w_hh"].T + lp["b"]
            i_g = jax.nn.sigmoid(gates[:, 0 * H:1 * H])
            f_g = jax.nn.sigmoid(gates[:, 1 * H:2 * H])
            g_g = jnp.tanh(gates[:, 2 * H:3 * H])
            o_g = jax.nn.sigmoid(gates[:, 3 * H:4 * H])
            c = f_g * c + i_g * g_g
            h = o_g * jnp.tanh(c)
            outs.append(h)
        h_seq = jnp.stack(outs, axis=1)
    return h @ raw["w_lin"].T + raw["b_lin"]


if __name__ == "__main__":
    # Small, LSTM-consistent shapes.
    batch, seq_len = 2, 8
    input_size, hidden_size, num_layers, output_size = 8, 32, 2, 4

    key = jax.random.PRNGKey(0)
    key, pkey, xkey = jax.random.split(key, 3)

    raw_params = init_raw_params(pkey, input_size, hidden_size, num_layers,
                                 output_size)
    params = prepare_params(raw_params)
    x = jax.random.normal(xkey, (batch, seq_len, input_size), jnp.float32)

    fwd = jax.jit(functools.partial(rnn_model_forward, params=params))
    out = fwd(x)
    jax.block_until_ready(out)

    assert out.shape == (batch, output_size), out.shape
    assert bool(jnp.all(jnp.isfinite(out)))

    # Loose tolerance: kernel uses bf16 MXU operands / activations (f32 acc).
    ref = _reference_forward(x, raw_params)
    max_err = float(jnp.max(jnp.abs(out - ref)))
    assert max_err < 0.1, f"max abs diff vs f32 reference too large: {max_err}"

    print("KERNEL_OK")
</pallas_src>

<mosaic_0001>
module attributes {stable_mosaic.version = 11 : i64} {
  func.func @_lstm_layer_kernel(%arg0: i32, %arg1: i32, %arg2: memref<8x2x32xbf16, #tpu.memory_space<vmem>>, %arg3: memref<32x128xbf16, #tpu.memory_space<vmem>>, %arg4: memref<32x128xbf16, #tpu.memory_space<vmem>>, %arg5: memref<1x128xf32, #tpu.memory_space<vmem>>, %arg6: memref<32x4xbf16, #tpu.memory_space<vmem>>, %arg7: memref<1x4xf32, #tpu.memory_space<vmem>>, %arg8: memref<2x4xf32, #tpu.memory_space<vmem>>, %arg9: memref<8x2x128xf32, #tpu.memory_space<vmem>>, %arg10: memref<2x32xf32, #tpu.memory_space<vmem>>, %arg11: memref<2x32xf32, #tpu.memory_space<vmem>>) attributes {dimension_semantics = [#tpu.dimension_semantics<parallel>, #tpu.dimension_semantics<arbitrary>], iteration_bounds = array<i64: 1, 1>, scalar_prefetch = 0 : i64, scratch_operands = 3 : i64, tpu.core_type = #tpu.core_type<tc>, window_params = [{transform_indices = @transform_0, window_bounds = array<i64: 8, 2, 32>}, {pipeline_mode = #tpu.pipeline_mode<synchronous>, transform_indices = @transform_1, window_bounds = array<i64: 32, 128>}, {pipeline_mode = #tpu.pipeline_mode<synchronous>, transform_indices = @transform_2, window_bounds = array<i64: 32, 128>}, {pipeline_mode = #tpu.pipeline_mode<synchronous>, transform_indices = @transform_3, window_bounds = array<i64: 1, 128>}, {pipeline_mode = #tpu.pipeline_mode<synchronous>, transform_indices = @transform_4, window_bounds = array<i64: 32, 4>}, {pipeline_mode = #tpu.pipeline_mode<synchronous>, transform_indices = @transform_5, window_bounds = array<i64: 1, 4>}, {transform_indices = @transform_6, window_bounds = array<i64: 2, 4>}]} {
    %c0_i32 = arith.constant 0 : i32
    %0 = arith.cmpi eq, %arg1, %c0_i32 : i32
    %1 = arith.extui %0 : i1 to i32
    %c0_i32_0 = arith.constant 0 : i32
    %2 = arith.cmpi ne, %1, %c0_i32_0 : i32
    scf.if %2 {
      %cst_85 = arith.constant 0.000000e+00 : f32
      %275 = vector.broadcast %cst_85 : f32 to vector<2x32xf32>
      %c0_86 = arith.constant 0 : index
      %c0_87 = arith.constant 0 : index
      %276 = vector.load %arg10[%c0_86, %c0_87] : memref<2x32xf32, #tpu.memory_space<vmem>>, vector<2x32xf32>
      tpu.vector_store %arg10[%c0_86, %c0_87], %275 {strides = array<i32>} : memref<2x32xf32, #tpu.memory_space<vmem>>, vector<2x32xf32>,
      %cst_88 = arith.constant 0.000000e+00 : f32
      %277 = vector.broadcast %cst_88 : f32 to vector<2x32xf32>
      %c0_89 = arith.constant 0 : index
      %c0_90 = arith.constant 0 : index
      %278 = vector.load %arg11[%c0_89, %c0_90] : memref<2x32xf32, #tpu.memory_space<vmem>>, vector<2x32xf32>
      tpu.vector_store %arg11[%c0_89, %c0_90], %277 {strides = array<i32>} : memref<2x32xf32, #tpu.memory_space<vmem>>, vector<2x32xf32>,
    } else {
    }
    %c0 = arith.constant 0 : index
    %c0_1 = arith.constant 0 : index
    %c0_2 = arith.constant 0 : index
    %3 = vector.load %arg2[%c0, %c0_1, %c0_2] : memref<8x2x32xbf16, #tpu.memory_space<vmem>>, vector<8x2x32xbf16>
    %4 = vector.shape_cast %3 : vector<8x2x32xbf16> to vector<16x32xbf16>
    %c0_3 = arith.constant 0 : index
    %c0_4 = arith.constant 0 : index
    %5 = vector.load %arg3[%c0_3, %c0_4] : memref<32x128xbf16, #tpu.memory_space<vmem>>, vector<32x128xbf16>
    %cst = arith.constant dense<0.000000e+00> : vector<16x128xf32>
    %6 = tpu.matmul %4, %5, %cst {dimension_numbers = #tpu.dot_dimension_numbers<[1], [0], [0], [1], [0, 0, 1, 1], [], []>} : vector<16x32xbf16>, vector<32x128xbf16>, vector<16x128xf32> -> vector<16x128xf32>
    %c0_5 = arith.constant 0 : index
    %c0_6 = arith.constant 0 : index
    %7 = vector.load %arg5[%c0_5, %c0_6] : memref<1x128xf32, #tpu.memory_space<vmem>>, vector<1x128xf32>
    %8 = vector.broadcast %7 : vector<1x128xf32> to vector<16x128xf32>
    %9 = arith.addf %6, %8 : vector<16x128xf32>
    %10 = vector.shape_cast %9 : vector<16x128xf32> to vector<8x2x128xf32>
    %c0_7 = arith.constant 0 : index
    %c0_8 = arith.constant 0 : index
    %c0_9 = arith.constant 0 : index
    %11 = vector.load %arg9[%c0_7, %c0_8, %c0_9] : memref<8x2x128xf32, #tpu.memory_space<vmem>>, vector<8x2x128xf32>
    tpu.vector_store %arg9[%c0_7, %c0_8, %c0_9], %10 {strides = array<i32>} : memref<8x2x128xf32, #tpu.memory_space<vmem>>, vector<8x2x128xf32>,
    %c0_10 = arith.constant 0 : index
    %c0_11 = arith.constant 0 : index
    %12 = vector.load %arg10[%c0_10, %c0_11] : memref<2x32xf32, #tpu.memory_space<vmem>>, vector<2x32xf32>
    %c0_12 = arith.constant 0 : index
    %c0_13 = arith.constant 0 : index
    %13 = vector.load %arg11[%c0_12, %c0_13] : memref<2x32xf32, #tpu.memory_space<vmem>>, vector<2x32xf32>
    %c0_i32_14 = arith.constant 0 : i32
    %14 = arith.index_cast %c0_i32_14 : i32 to index
    %c0_15 = arith.constant 0 : index
    %c0_16 = arith.constant 0 : index
    %15 = vector.load %arg9[%14, %c0_15, %c0_16] : memref<8x2x128xf32, #tpu.memory_space<vmem>>, vector<1x2x128xf32>
    %16 = vector.shape_cast %15 : vector<1x2x128xf32> to vector<2x128xf32>
    %17 = arith.truncf %12 : vector<2x32xf32> to vector<2x32xbf16>
    %c0_17 = arith.constant 0 : index
    %c0_18 = arith.constant 0 : index
    %18 = vector.load %arg4[%c0_17, %c0_18] : memref<32x128xbf16, #tpu.memory_space<vmem>>, vector<32x128xbf16>
    %cst_19 = arith.constant dense<0.000000e+00> : vector<2x128xf32>
    %19 = tpu.matmul %17, %18, %cst_19 {dimension_numbers = #tpu.dot_dimension_numbers<[1], [0], [0], [1], [0, 0, 1, 1], [], []>} : vector<2x32xbf16>, vector<32x128xbf16>, vector<2x128xf32> -> vector<2x128xf32>
    %20 = arith.addf %16, %19 : vector<2x128xf32>
    %21 = vector.extract_strided_slice %20 {offsets = [0, 0], sizes = [2, 32], strides = [1, 1]} : vector<2x128xf32> to vector<2x32xf32>
    %22 = arith.negf %21 : vector<2x32xf32>
    %23 = math.exp %22 : vector<2x32xf32>
    %cst_20 = arith.constant 1.000000e+00 : f32
    %24 = vector.broadcast %cst_20 : f32 to vector<2x32xf32>
    %25 = arith.addf %24, %23 : vector<2x32xf32>
    %26 = arith.divf %24, %25 : vector<2x32xf32>
    %27 = vector.extract_strided_slice %20 {offsets = [0, 32], sizes = [2, 32], strides = [1, 1]} : vector<2x128xf32> to vector<2x32xf32>
    %28 = arith.negf %27 : vector<2x32xf32>
    %29 = math.exp %28 : vector<2x32xf32>
    %cst_21 = arith.constant 1.000000e+00 : f32
    %30 = vector.broadcast %cst_21 : f32 to vector<2x32xf32>
    %31 = arith.addf %30, %29 : vector<2x32xf32>
    %32 = arith.divf %30, %31 : vector<2x32xf32>
    %33 = vector.extract_strided_slice %20 {offsets = [0, 64], sizes = [2, 32], strides = [1, 1]} : vector<2x128xf32> to vector<2x32xf32>
    %34 = math.tanh %33 : vector<2x32xf32>
    %35 = vector.extract_strided_slice %20 {offsets = [0, 96], sizes = [2, 32], strides = [1, 1]} : vector<2x128xf32> to vector<2x32xf32>
    %36 = arith.negf %35 : vector<2x32xf32>
    %37 = math.exp %36 : vector<2x32xf32>
    %cst_22 = arith.constant 1.000000e+00 : f32
    %38 = vector.broadcast %cst_22 : f32 to vector<2x32xf32>
    %39 = arith.addf %38, %37 : vector<2x32xf32>
    %40 = arith.divf %38, %39 : vector<2x32xf32>
    %41 = arith.mulf %32, %13 : vector<2x32xf32>
    %42 = arith.mulf %26, %34 : vector<2x32xf32>
    %43 = arith.addf %41, %42 : vector<2x32xf32>
    %44 = math.tanh %43 : vector<2x32xf32>
    %45 = arith.mulf %40, %44 : vector<2x32xf32>
    %c1_i32 = arith.constant 1 : i32
    %46 = arith.index_cast %c1_i32 : i32 to index
    %c0_23 = arith.constant 0 : index
    %c0_24 = arith.constant 0 : index
    %47 = vector.load %arg9[%46, %c0_23, %c0_24] : memref<8x2x128xf32, #tpu.memory_space<vmem>>, vector<1x2x128xf32>
    %48 = vector.shape_cast %47 : vector<1x2x128xf32> to vector<2x128xf32>
    %49 = arith.truncf %45 : vector<2x32xf32> to vector<2x32xbf16>
    %c0_25 = arith.constant 0 : index
    %c0_26 = arith.constant 0 : index
    %50 = vector.load %arg4[%c0_25, %c0_26] : memref<32x128xbf16, #tpu.memory_space<vmem>>, vector<32x128xbf16>
    %cst_27 = arith.constant dense<0.000000e+00> : vector<2x128xf32>
    %51 = tpu.matmul %49, %50, %cst_27 {dimension_numbers = #tpu.dot_dimension_numbers<[1], [0], [0], [1], [0, 0, 1, 1], [], []>} : vector<2x32xbf16>, vector<32x128xbf16>, vector<2x128xf32> -> vector<2x128xf32>
    %52 = arith.addf %48, %51 : vector<2x128xf32>
    %53 = vector.extract_strided_slice %52 {offsets = [0, 0], sizes = [2, 32], strides = [1, 1]} : vector<2x128xf32> to vector<2x32xf32>
    %54 = arith.negf %53 : vector<2x32xf32>
    %55 = math.exp %54 : vector<2x32xf32>
    %cst_28 = arith.constant 1.000000e+00 : f32
    %56 = vector.broadcast %cst_28 : f32 to vector<2x32xf32>
    %57 = arith.addf %56, %55 : vector<2x32xf32>
    %58 = arith.divf %56, %57 : vector<2x32xf32>
    %59 = vector.extract_strided_slice %52 {offsets = [0, 32], sizes = [2, 32], strides = [1, 1]} : vector<2x128xf32> to vector<2x32xf32>
    %60 = arith.negf %59 : vector<2x32xf32>
    %61 = math.exp %60 : vector<2x32xf32>
    %cst_29 = arith.constant 1.000000e+00 : f32
    %62 = vector.broadcast %cst_29 : f32 to vector<2x32xf32>
    %63 = arith.addf %62, %61 : vector<2x32xf32>
    %64 = arith.divf %62, %63 : vector<2x32xf32>
    %65 = vector.extract_strided_slice %52 {offsets = [0, 64], sizes = [2, 32], strides = [1, 1]} : vector<2x128xf32> to vector<2x32xf32>
    %66 = math.tanh %65 : vector<2x32xf32>
    %67 = vector.extract_strided_slice %52 {offsets = [0, 96], sizes = [2, 32], strides = [1, 1]} : vector<2x128xf32> to vector<2x32xf32>
    %68 = arith.negf %67 : vector<2x32xf32>
    %69 = math.exp %68 : vector<2x32xf32>
    %cst_30 = arith.constant 1.000000e+00 : f32
    %70 = vector.broadcast %cst_30 : f32 to vector<2x32xf32>
    %71 = arith.addf %70, %69 : vector<2x32xf32>
    %72 = arith.divf %70, %71 : vector<2x32xf32>
    %73 = arith.mulf %64, %43 : vector<2x32xf32>
    %74 = arith.mulf %58, %66 : vector<2x32xf32>
    %75 = arith.addf %73, %74 : vector<2x32xf32>
    %76 = math.tanh %75 : vector<2x32xf32>
    %77 = arith.mulf %72, %76 : vector<2x32xf32>
    %c2_i32 = arith.constant 2 : i32
    %78 = arith.index_cast %c2_i32 : i32 to index
    %c0_31 = arith.constant 0 : index
    %c0_32 = arith.constant 0 : index
    %79 = vector.load %arg9[%78, %c0_31, %c0_32] : memref<8x2x128xf32, #tpu.memory_space<vmem>>, vector<1x2x128xf32>
    %80 = vector.shape_cast %79 : vector<1x2x128xf32> to vector<2x128xf32>
    %81 = arith.truncf %77 : vector<2x32xf32> to vector<2x32xbf16>
    %c0_33 = arith.constant 0 : index
    %c0_34 = arith.constant 0 : index
    %82 = vector.load %arg4[%c0_33, %c0_34] : memref<32x128xbf16, #tpu.memory_space<vmem>>, vector<32x128xbf16>
    %cst_35 = arith.constant dense<0.000000e+00> : vector<2x128xf32>
    %83 = tpu.matmul %81, %82, %cst_35 {dimension_numbers = #tpu.dot_dimension_numbers<[1], [0], [0], [1], [0, 0, 1, 1], [], []>} : vector<2x32xbf16>, vector<32x128xbf16>, vector<2x128xf32> -> vector<2x128xf32>
    %84 = arith.addf %80, %83 : vector<2x128xf32>
    %85 = vector.extract_strided_slice %84 {offsets = [0, 0], sizes = [2, 32], strides = [1, 1]} : vector<2x128xf32> to vector<2x32xf32>
    %86 = arith.negf %85 : vector<2x32xf32>
    %87 = math.exp %86 : vector<2x32xf32>
    %cst_36 = arith.constant 1.000000e+00 : f32
    %88 = vector.broadcast %cst_36 : f32 to vector<2x32xf32>
    %89 = arith.addf %88, %87 : vector<2x32xf32>
    %90 = arith.divf %88, %89 : vector<2x32xf32>
    %91 = vector.extract_strided_slice %84 {offsets = [0, 32], sizes = [2, 32], strides = [1, 1]} : vector<2x128xf32> to vector<2x32xf32>
    %92 = arith.negf %91 : vector<2x32xf32>
    %93 = math.exp %92 : vector<2x32xf32>
    %cst_37 = arith.constant 1.000000e+00 : f32
    %94 = vector.broadcast %cst_37 : f32 to vector<2x32xf32>
    %95 = arith.addf %94, %93 : vector<2x32xf32>
    %96 = arith.divf %94, %95 : vector<2x32xf32>
    %97 = vector.extract_strided_slice %84 {offsets = [0, 64], sizes = [2, 32], strides = [1, 1]} : vector<2x128xf32> to vector<2x32xf32>
    %98 = math.tanh %97 : vector<2x32xf32>
    %99 = vector.extract_strided_slice %84 {offsets = [0, 96], sizes = [2, 32], strides = [1, 1]} : vector<2x128xf32> to vector<2x32xf32>
    %100 = arith.negf %99 : vector<2x32xf32>
    %101 = math.exp %100 : vector<2x32xf32>
    %cst_38 = arith.constant 1.000000e+00 : f32
    %102 = vector.broadcast %cst_38 : f32 to vector<2x32xf32>
    %103 = arith.addf %102, %101 : vector<2x32xf32>
    %104 = arith.divf %102, %103 : vector<2x32xf32>
    %105 = arith.mulf %96, %75 : vector<2x32xf32>
    %106 = arith.mulf %90, %98 : vector<2x32xf32>
    %107 = arith.addf %105, %106 : vector<2x32xf32>
    %108 = math.tanh %107 : vector<2x32xf32>
    %109 = arith.mulf %104, %108 : vector<2x32xf32>
    %c3_i32 = arith.constant 3 : i32
    %110 = arith.index_cast %c3_i32 : i32 to index
    %c0_39 = arith.constant 0 : index
    %c0_40 = arith.constant 0 : index
    %111 = vector.load %arg9[%110, %c0_39, %c0_40] : memref<8x2x128xf32, #tpu.memory_space<vmem>>, vector<1x2x128xf32>
    %112 = vector.shape_cast %111 : vector<1x2x128xf32> to vector<2x128xf32>
    %113 = arith.truncf %109 : vector<2x32xf32> to vector<2x32xbf16>
    %c0_41 = arith.constant 0 : index
    %c0_42 = arith.constant 0 : index
    %114 = vector.load %arg4[%c0_41, %c0_42] : memref<32x128xbf16, #tpu.memory_space<vmem>>, vector<32x128xbf16>
    %cst_43 = arith.constant dense<0.000000e+00> : vector<2x128xf32>
    %115 = tpu.matmul %113, %114, %cst_43 {dimension_numbers = #tpu.dot_dimension_numbers<[1], [0], [0], [1], [0, 0, 1, 1], [], []>} : vector<2x32xbf16>, vector<32x128xbf16>, vector<2x128xf32> -> vector<2x128xf32>
    %116 = arith.addf %112, %115 : vector<2x128xf32>
    %117 = vector.extract_strided_slice %116 {offsets = [0, 0], sizes = [2, 32], strides = [1, 1]} : vector<2x128xf32> to vector<2x32xf32>
    %118 = arith.negf %117 : vector<2x32xf32>
    %119 = math.exp %118 : vector<2x32xf32>
    %cst_44 = arith.constant 1.000000e+00 : f32
    %120 = vector.broadcast %cst_44 : f32 to vector<2x32xf32>
    %121 = arith.addf %120, %119 : vector<2x32xf32>
    %122 = arith.divf %120, %121 : vector<2x32xf32>
    %123 = vector.extract_strided_slice %116 {offsets = [0, 32], sizes = [2, 32], strides = [1, 1]} : vector<2x128xf32> to vector<2x32xf32>
    %124 = arith.negf %123 : vector<2x32xf32>
    %125 = math.exp %124 : vector<2x32xf32>
    %cst_45 = arith.constant 1.000000e+00 : f32
    %126 = vector.broadcast %cst_45 : f32 to vector<2x32xf32>
    %127 = arith.addf %126, %125 : vector<2x32xf32>
    %128 = arith.divf %126, %127 : vector<2x32xf32>
    %129 = vector.extract_strided_slice %116 {offsets = [0, 64], sizes = [2, 32], strides = [1, 1]} : vector<2x128xf32> to vector<2x32xf32>
    %130 = math.tanh %129 : vector<2x32xf32>
    %131 = vector.extract_strided_slice %116 {offsets = [0, 96], sizes = [2, 32], strides = [1, 1]} : vector<2x128xf32> to vector<2x32xf32>
    %132 = arith.negf %131 : vector<2x32xf32>
    %133 = math.exp %132 : vector<2x32xf32>
    %cst_46 = arith.constant 1.000000e+00 : f32
    %134 = vector.broadcast %cst_46 : f32 to vector<2x32xf32>
    %135 = arith.addf %134, %133 : vector<2x32xf32>
    %136 = arith.divf %134, %135 : vector<2x32xf32>
    %137 = arith.mulf %128, %107 : vector<2x32xf32>
    %138 = arith.mulf %122, %130 : vector<2x32xf32>
    %139 = arith.addf %137, %138 : vector<2x32xf32>
    %140 = math.tanh %139 : vector<2x32xf32>
    %141 = arith.mulf %136, %140 : vector<2x32xf32>
    %c4_i32 = arith.constant 4 : i32
    %142 = arith.index_cast %c4_i32 : i32 to index
    %c0_47 = arith.constant 0 : index
    %c0_48 = arith.constant 0 : index
    %143 = vector.load %arg9[%142, %c0_47, %c0_48] : memref<8x2x128xf32, #tpu.memory_space<vmem>>, vector<1x2x128xf32>
    %144 = vector.shape_cast %143 : vector<1x2x128xf32> to vector<2x128xf32>
    %145 = arith.truncf %141 : vector<2x32xf32> to vector<2x32xbf16>
    %c0_49 = arith.constant 0 : index
    %c0_50 = arith.constant 0 : index
    %146 = vector.load %arg4[%c0_49, %c0_50] : memref<32x128xbf16, #tpu.memory_space<vmem>>, vector<32x128xbf16>
    %cst_51 = arith.constant dense<0.000000e+00> : vector<2x128xf32>
    %147 = tpu.matmul %145, %146, %cst_51 {dimension_numbers = #tpu.dot_dimension_numbers<[1], [0], [0], [1], [0, 0, 1, 1], [], []>} : vector<2x32xbf16>, vector<32x128xbf16>, vector<2x128xf32> -> vector<2x128xf32>
    %148 = arith.addf %144, %147 : vector<2x128xf32>
    %149 = vector.extract_strided_slice %148 {offsets = [0, 0], sizes = [2, 32], strides = [1, 1]} : vector<2x128xf32> to vector<2x32xf32>
    %150 = arith.negf %149 : vector<2x32xf32>
    %151 = math.exp %150 : vector<2x32xf32>
    %cst_52 = arith.constant 1.000000e+00 : f32
    %152 = vector.broadcast %cst_52 : f32 to vector<2x32xf32>
    %153 = arith.addf %152, %151 : vector<2x32xf32>
    %154 = arith.divf %152, %153 : vector<2x32xf32>
    %155 = vector.extract_strided_slice %148 {offsets = [0, 32], sizes = [2, 32], strides = [1, 1]} : vector<2x128xf32> to vector<2x32xf32>
    %156 = arith.negf %155 : vector<2x32xf32>
    %157 = math.exp %156 : vector<2x32xf32>
    %cst_53 = arith.constant 1.000000e+00 : f32
    %158 = vector.broadcast %cst_53 : f32 to vector<2x32xf32>
    %159 = arith.addf %158, %157 : vector<2x32xf32>
    %160 = arith.divf %158, %159 : vector<2x32xf32>
    %161 = vector.extract_strided_slice %148 {offsets = [0, 64], sizes = [2, 32], strides = [1, 1]} : vector<2x128xf32> to vector<2x32xf32>
    %162 = math.tanh %161 : vector<2x32xf32>
    %163 = vector.extract_strided_slice %148 {offsets = [0, 96], sizes = [2, 32], strides = [1, 1]} : vector<2x128xf32> to vector<2x32xf32>
    %164 = arith.negf %163 : vector<2x32xf32>
    %165 = math.exp %164 : vector<2x32xf32>
    %cst_54 = arith.constant 1.000000e+00 : f32
    %166 = vector.broadcast %cst_54 : f32 to vector<2x32xf32>
    %167 = arith.addf %166, %165 : vector<2x32xf32>
    %168 = arith.divf %166, %167 : vector<2x32xf32>
    %169 = arith.mulf %160, %139 : vector<2x32xf32>
    %170 = arith.mulf %154, %162 : vector<2x32xf32>
    %171 = arith.addf %169, %170 : vector<2x32xf32>
    %172 = math.tanh %171 : vector<2x32xf32>
    %173 = arith.mulf %168, %172 : vector<2x32xf32>
    %c5_i32 = arith.constant 5 : i32
    %174 = arith.index_cast %c5_i32 : i32 to index
    %c0_55 = arith.constant 0 : index
    %c0_56 = arith.constant 0 : index
    %175 = vector.load %arg9[%174, %c0_55, %c0_56] : memref<8x2x128xf32, #tpu.memory_space<vmem>>, vector<1x2x128xf32>
    %176 = vector.shape_cast %175 : vector<1x2x128xf32> to vector<2x128xf32>
    %177 = arith.truncf %173 : vector<2x32xf32> to vector<2x32xbf16>
    %c0_57 = arith.constant 0 : index
    %c0_58 = arith.constant 0 : index
    %178 = vector.load %arg4[%c0_57, %c0_58] : memref<32x128xbf16, #tpu.memory_space<vmem>>, vector<32x128xbf16>
    %cst_59 = arith.constant dense<0.000000e+00> : vector<2x128xf32>
    %179 = tpu.matmul %177, %178, %cst_59 {dimension_numbers = #tpu.dot_dimension_numbers<[1], [0], [0], [1], [0, 0, 1, 1], [], []>} : vector<2x32xbf16>, vector<32x128xbf16>, vector<2x128xf32> -> vector<2x128xf32>
    %180 = arith.addf %176, %179 : vector<2x128xf32>
    %181 = vector.extract_strided_slice %180 {offsets = [0, 0], sizes = [2, 32], strides = [1, 1]} : vector<2x128xf32> to vector<2x32xf32>
    %182 = arith.negf %181 : vector<2x32xf32>
    %183 = math.exp %182 : vector<2x32xf32>
    %cst_60 = arith.constant 1.000000e+00 : f32
    %184 = vector.broadcast %cst_60 : f32 to vector<2x32xf32>
    %185 = arith.addf %184, %183 : vector<2x32xf32>
    %186 = arith.divf %184, %185 : vector<2x32xf32>
    %187 = vector.extract_strided_slice %180 {offsets = [0, 32], sizes = [2, 32], strides = [1, 1]} : vector<2x128xf32> to vector<2x32xf32>
    %188 = arith.negf %187 : vector<2x32xf32>
    %189 = math.exp %188 : vector<2x32xf32>
    %cst_61 = arith.constant 1.000000e+00 : f32
    %190 = vector.broadcast %cst_61 : f32 to vector<2x32xf32>
    %191 = arith.addf %190, %189 : vector<2x32xf32>
    %192 = arith.divf %190, %191 : vector<2x32xf32>
    %193 = vector.extract_strided_slice %180 {offsets = [0, 64], sizes = [2, 32], strides = [1, 1]} : vector<2x128xf32> to vector<2x32xf32>
    %194 = math.tanh %193 : vector<2x32xf32>
    %195 = vector.extract_strided_slice %180 {offsets = [0, 96], sizes = [2, 32], strides = [1, 1]} : vector<2x128xf32> to vector<2x32xf32>
    %196 = arith.negf %195 : vector<2x32xf32>
    %197 = math.exp %196 : vector<2x32xf32>
    %cst_62 = arith.constant 1.000000e+00 : f32
    %198 = vector.broadcast %cst_62 : f32 to vector<2x32xf32>
    %199 = arith.addf %198, %197 : vector<2x32xf32>
    %200 = arith.divf %198, %199 : vector<2x32xf32>
    %201 = arith.mulf %192, %171 : vector<2x32xf32>
    %202 = arith.mulf %186, %194 : vector<2x32xf32>
    %203 = arith.addf %201, %202 : vector<2x32xf32>
    %204 = math.tanh %203 : vector<2x32xf32>
    %205 = arith.mulf %200, %204 : vector<2x32xf32>
    %c6_i32 = arith.constant 6 : i32
    %206 = arith.index_cast %c6_i32 : i32 to index
    %c0_63 = arith.constant 0 : index
    %c0_64 = arith.constant 0 : index
    %207 = vector.load %arg9[%206, %c0_63, %c0_64] : memref<8x2x128xf32, #tpu.memory_space<vmem>>, vector<1x2x128xf32>
    %208 = vector.shape_cast %207 : vector<1x2x128xf32> to vector<2x128xf32>
    %209 = arith.truncf %205 : vector<2x32xf32> to vector<2x32xbf16>
    %c0_65 = arith.constant 0 : index
    %c0_66 = arith.constant 0 : index
    %210 = vector.load %arg4[%c0_65, %c0_66] : memref<32x128xbf16, #tpu.memory_space<vmem>>, vector<32x128xbf16>
    %cst_67 = arith.constant dense<0.000000e+00> : vector<2x128xf32>
    %211 = tpu.matmul %209, %210, %cst_67 {dimension_numbers = #tpu.dot_dimension_numbers<[1], [0], [0], [1], [0, 0, 1, 1], [], []>} : vector<2x32xbf16>, vector<32x128xbf16>, vector<2x128xf32> -> vector<2x128xf32>
    %212 = arith.addf %208, %211 : vector<2x128xf32>
    %213 = vector.extract_strided_slice %212 {offsets = [0, 0], sizes = [2, 32], strides = [1, 1]} : vector<2x128xf32> to vector<2x32xf32>
    %214 = arith.negf %213 : vector<2x32xf32>
    %215 = math.exp %214 : vector<2x32xf32>
    %cst_68 = arith.constant 1.000000e+00 : f32
    %216 = vector.broadcast %cst_68 : f32 to vector<2x32xf32>
    %217 = arith.addf %216, %215 : vector<2x32xf32>
    %218 = arith.divf %216, %217 : vector<2x32xf32>
    %219 = vector.extract_strided_slice %212 {offsets = [0, 32], sizes = [2, 32], strides = [1, 1]} : vector<2x128xf32> to vector<2x32xf32>
    %220 = arith.negf %219 : vector<2x32xf32>
    %221 = math.exp %220 : vector<2x32xf32>
    %cst_69 = arith.constant 1.000000e+00 : f32
    %222 = vector.broadcast %cst_69 : f32 to vector<2x32xf32>
    %223 = arith.addf %222, %221 : vector<2x32xf32>
    %224 = arith.divf %222, %223 : vector<2x32xf32>
    %225 = vector.extract_strided_slice %212 {offsets = [0, 64], sizes = [2, 32], strides = [1, 1]} : vector<2x128xf32> to vector<2x32xf32>
    %226 = math.tanh %225 : vector<2x32xf32>
    %227 = vector.extract_strided_slice %212 {offsets = [0, 96], sizes = [2, 32], strides = [1, 1]} : vector<2x128xf32> to vector<2x32xf32>
    %228 = arith.negf %227 : vector<2x32xf32>
    %229 = math.exp %228 : vector<2x32xf32>
    %cst_70 = arith.constant 1.000000e+00 : f32
    %230 = vector.broadcast %cst_70 : f32 to vector<2x32xf32>
    %231 = arith.addf %230, %229 : vector<2x32xf32>
    %232 = arith.divf %230, %231 : vector<2x32xf32>
    %233 = arith.mulf %224, %203 : vector<2x32xf32>
    %234 = arith.mulf %218, %226 : vector<2x32xf32>
    %235 = arith.addf %233, %234 : vector<2x32xf32>
    %236 = math.tanh %235 : vector<2x32xf32>
    %237 = arith.mulf %232, %236 : vector<2x32xf32>
    %c7_i32 = arith.constant 7 : i32
    %238 = arith.index_cast %c7_i32 : i32 to index
    %c0_71 = arith.constant 0 : index
    %c0_72 = arith.constant 0 : index
    %239 = vector.load %arg9[%238, %c0_71, %c0_72] : memref<8x2x128xf32, #tpu.memory_space<vmem>>, vector<1x2x128xf32>
    %240 = vector.shape_cast %239 : vector<1x2x128xf32> to vector<2x128xf32>
    %241 = arith.truncf %237 : vector<2x32xf32> to vector<2x32xbf16>
    %c0_73 = arith.constant 0 : index
    %c0_74 = arith.constant 0 : index
    %242 = vector.load %arg4[%c0_73, %c0_74] : memref<32x128xbf16, #tpu.memory_space<vmem>>, vector<32x128xbf16>
    %cst_75 = arith.constant dense<0.000000e+00> : vector<2x128xf32>
    %243 = tpu.matmul %241, %242, %cst_75 {dimension_numbers = #tpu.dot_dimension_numbers<[1], [0], [0], [1], [0, 0, 1, 1], [], []>} : vector<2x32xbf16>, vector<32x128xbf16>, vector<2x128xf32> -> vector<2x128xf32>
    %244 = arith.addf %240, %243 : vector<2x128xf32>
    %245 = vector.extract_strided_slice %244 {offsets = [0, 0], sizes = [2, 32], strides = [1, 1]} : vector<2x128xf32> to vector<2x32xf32>
    %246 = arith.negf %245 : vector<2x32xf32>
    %247 = math.exp %246 : vector<2x32xf32>
    %cst_76 = arith.constant 1.000000e+00 : f32
    %248 = vector.broadcast %cst_76 : f32 to vector<2x32xf32>
    %249 = arith.addf %248, %247 : vector<2x32xf32>
    %250 = arith.divf %248, %249 : vector<2x32xf32>
    %251 = vector.extract_strided_slice %244 {offsets = [0, 32], sizes = [2, 32], strides = [1, 1]} : vector<2x128xf32> to vector<2x32xf32>
    %252 = arith.negf %251 : vector<2x32xf32>
    %253 = math.exp %252 : vector<2x32xf32>
    %cst_77 = arith.constant 1.000000e+00 : f32
    %254 = vector.broadcast %cst_77 : f32 to vector<2x32xf32>
    %255 = arith.addf %254, %253 : vector<2x32xf32>
    %256 = arith.divf %254, %255 : vector<2x32xf32>
    %257 = vector.extract_strided_slice %244 {offsets = [0, 64], sizes = [2, 32], strides = [1, 1]} : vector<2x128xf32> to vector<2x32xf32>
    %258 = math.tanh %257 : vector<2x32xf32>
    %259 = vector.extract_strided_slice %244 {offsets = [0, 96], sizes = [2, 32], strides = [1, 1]} : vector<2x128xf32> to vector<2x32xf32>
    %260 = arith.negf %259 : vector<2x32xf32>
    %261 = math.exp %260 : vector<2x32xf32>
    %cst_78 = arith.constant 1.000000e+00 : f32
    %262 = vector.broadcast %cst_78 : f32 to vector<2x32xf32>
    %263 = arith.addf %262, %261 : vector<2x32xf32>
    %264 = arith.divf %262, %263 : vector<2x32xf32>
    %265 = arith.mulf %256, %235 : vector<2x32xf32>
    %266 = arith.mulf %250, %258 : vector<2x32xf32>
    %267 = arith.addf %265, %266 : vector<2x32xf32>
    %268 = math.tanh %267 : vector<2x32xf32>
    %269 = arith.mulf %264, %268 : vector<2x32xf32>
    %c8_i32 = arith.constant 8 : i32
    %c0_79 = arith.constant 0 : index
    %c0_80 = arith.constant 0 : index
    %270 = vector.load %arg10[%c0_79, %c0_80] : memref<2x32xf32, #tpu.memory_space<vmem>>, vector<2x32xf32>
    tpu.vector_store %arg10[%c0_79, %c0_80], %269 {strides = array<i32>} : memref<2x32xf32, #tpu.memory_space<vmem>>, vector<2x32xf32>,
    %c0_81 = arith.constant 0 : index
    %c0_82 = arith.constant 0 : index
    %271 = vector.load %arg11[%c0_81, %c0_82] : memref<2x32xf32, #tpu.memory_space<vmem>>, vector<2x32xf32>
    tpu.vector_store %arg11[%c0_81, %c0_82], %267 {strides = array<i32>} : memref<2x32xf32, #tpu.memory_space<vmem>>, vector<2x32xf32>,
    %c0_i32_83 = arith.constant 0 : i32
    %272 = arith.cmpi eq, %arg1, %c0_i32_83 : i32
    %273 = arith.extui %272 : i1 to i32
    %c0_i32_84 = arith.constant 0 : i32
    %274 = arith.cmpi ne, %273, %c0_i32_84 : i32
    scf.if %274 {
      %275 = arith.truncf %269 : vector<2x32xf32> to vector<2x32xbf16>
      %c0_85 = arith.constant 0 : index
      %c0_86 = arith.constant 0 : index
      %276 = vector.load %arg6[%c0_85, %c0_86] : memref<32x4xbf16, #tpu.memory_space<vmem>>, vector<32x4xbf16>
      %cst_87 = arith.constant dense<0.000000e+00> : vector<2x4xf32>
      %277 = tpu.matmul %275, %276, %cst_87 {dimension_numbers = #tpu.dot_dimension_numbers<[1], [0], [0], [1], [0, 0, 1, 1], [], []>} : vector<2x32xbf16>, vector<32x4xbf16>, vector<2x4xf32> -> vector<2x4xf32>
      %c0_88 = arith.constant 0 : index
      %c0_89 = arith.constant 0 : index
      %278 = vector.load %arg7[%c0_88, %c0_89] : memref<1x4xf32, #tpu.memory_space<vmem>>, vector<1x4xf32>
      %279 = vector.broadcast %278 : vector<1x4xf32> to vector<2x4xf32>
      %280 = arith.addf %277, %279 : vector<2x4xf32>
      %c0_90 = arith.constant 0 : index
      %c0_91 = arith.constant 0 : index
      %281 = vector.load %arg8[%c0_90, %c0_91] : memref<2x4xf32, #tpu.memory_space<vmem>>, vector<2x4xf32>
      tpu.vector_store %arg8[%c0_90, %c0_91], %280 {strides = array<i32>} : memref<2x4xf32, #tpu.memory_space<vmem>>, vector<2x4xf32>,
    } else {
    }
    return
  }
  func.func @transform_0(%arg0: i32, %arg1: i32) -> (i32, i32, i32) {
    %c0_i32 = arith.constant 0 : i32
    %c0_i32_0 = arith.constant 0 : i32
    return %arg1, %arg0, %c0_i32 : i32, i32, i32
  }
  func.func @transform_1(%arg0: i32, %arg1: i32) -> (i32, i32) {
    %c0_i32 = arith.constant 0 : i32
    %c0_i32_0 = arith.constant 0 : i32
    %c0_i32_1 = arith.constant 0 : i32
    return %c0_i32, %c0_i32_0 : i32, i32
  }
  func.func @transform_2(%arg0: i32, %arg1: i32) -> (i32, i32) {
    %c0_i32 = arith.constant 0 : i32
    %c0_i32_0 = arith.constant 0 : i32
    %c0_i32_1 = arith.constant 0 : i32
    return %c0_i32, %c0_i32_0 : i32, i32
  }
  func.func @transform_3(%arg0: i32, %arg1: i32) -> (i32, i32) {
    %c0_i32 = arith.constant 0 : i32
    %c0_i32_0 = arith.constant 0 : i32
    %c0_i32_1 = arith.constant 0 : i32
    return %c0_i32, %c0_i32_0 : i32, i32
  }
  func.func @transform_4(%arg0: i32, %arg1: i32) -> (i32, i32) {
    %c0_i32 = arith.constant 0 : i32
    %c0_i32_0 = arith.constant 0 : i32
    %c0_i32_1 = arith.constant 0 : i32
    return %c0_i32, %c0_i32_0 : i32, i32
  }
  func.func @transform_5(%arg0: i32, %arg1: i32) -> (i32, i32) {
    %c0_i32 = arith.constant 0 : i32
    %c0_i32_0 = arith.constant 0 : i32
    %c0_i32_1 = arith.constant 0 : i32
    return %c0_i32, %c0_i32_0 : i32, i32
  }
  func.func @transform_6(%arg0: i32, %arg1: i32) -> (i32, i32) {
    %c0_i32 = arith.constant 0 : i32
    %c0_i32_0 = arith.constant 0 : i32
    return %arg0, %c0_i32 : i32, i32
  }
}

module attributes {stable_mosaic.version = 11 : i64} {
  func.func @_lstm_layer_kernel(%arg0: i32, %arg1: i32, %arg2: memref<8x2x8xbf16, #tpu.memory_space<vmem>>, %arg3: memref<8x128xbf16, #tpu.memory_space<vmem>>, %arg4: memref<32x128xbf16, #tpu.memory_space<vmem>>, %arg5: memref<1x128xf32, #tpu.memory_space<vmem>>, %arg6: memref<8x2x32xbf16, #tpu.memory_space<vmem>>, %arg7: memref<8x2x128xf32, #tpu.memory_space<vmem>>, %arg8: memref<2x32xf32, #tpu.memory_space<vmem>>, %arg9: memref<2x32xf32, #tpu.memory_space<vmem>>) attributes {dimension_semantics = [#tpu.dimension_semantics<parallel>, #tpu.dimension_semantics<arbitrary>], iteration_bounds = array<i64: 1, 1>, scalar_prefetch = 0 : i64, scratch_operands = 3 : i64, tpu.core_type = #tpu.core_type<tc>, window_params = [{transform_indices = @transform_0, window_bounds = array<i64: 8, 2, 8>}, {pipeline_mode = #tpu.pipeline_mode<synchronous>, transform_indices = @transform_1, window_bounds = array<i64: 8, 128>}, {pipeline_mode = #tpu.pipeline_mode<synchronous>, transform_indices = @transform_2, window_bounds = array<i64: 32, 128>}, {pipeline_mode = #tpu.pipeline_mode<synchronous>, transform_indices = @transform_3, window_bounds = array<i64: 1, 128>}, {transform_indices = @transform_4, window_bounds = array<i64: 8, 2, 32>}]} {
    %c0_i32 = arith.constant 0 : i32
    %0 = arith.cmpi eq, %arg1, %c0_i32 : i32
    %1 = arith.extui %0 : i1 to i32
    %c0_i32_0 = arith.constant 0 : i32
    %2 = arith.cmpi ne, %1, %c0_i32_0 : i32
    scf.if %2 {
      %cst_99 = arith.constant 0.000000e+00 : f32
      %312 = vector.broadcast %cst_99 : f32 to vector<2x32xf32>
      %c0_100 = arith.constant 0 : index
      %c0_101 = arith.constant 0 : index
      %313 = vector.load %arg8[%c0_100, %c0_101] : memref<2x32xf32, #tpu.memory_space<vmem>>, vector<2x32xf32>
      tpu.vector_store %arg8[%c0_100, %c0_101], %312 {strides = array<i32>} : memref<2x32xf32, #tpu.memory_space<vmem>>, vector<2x32xf32>,
      %cst_102 = arith.constant 0.000000e+00 : f32
      %314 = vector.broadcast %cst_102 : f32 to vector<2x32xf32>
      %c0_103 = arith.constant 0 : index
      %c0_104 = arith.constant 0 : index
      %315 = vector.load %arg9[%c0_103, %c0_104] : memref<2x32xf32, #tpu.memory_space<vmem>>, vector<2x32xf32>
      tpu.vector_store %arg9[%c0_103, %c0_104], %314 {strides = array<i32>} : memref<2x32xf32, #tpu.memory_space<vmem>>, vector<2x32xf32>,
    } else {
    }
    %c0 = arith.constant 0 : index
    %c0_1 = arith.constant 0 : index
    %c0_2 = arith.constant 0 : index
    %3 = vector.load %arg2[%c0, %c0_1, %c0_2] : memref<8x2x8xbf16, #tpu.memory_space<vmem>>, vector<8x2x8xbf16>
    %4 = vector.shape_cast %3 : vector<8x2x8xbf16> to vector<16x8xbf16>
    %c0_3 = arith.constant 0 : index
    %c0_4 = arith.constant 0 : index
    %5 = vector.load %arg3[%c0_3, %c0_4] : memref<8x128xbf16, #tpu.memory_space<vmem>>, vector<8x128xbf16>
    %cst = arith.constant dense<0.000000e+00> : vector<16x128xf32>
    %6 = tpu.matmul %4, %5, %cst {dimension_numbers = #tpu.dot_dimension_numbers<[1], [0], [0], [1], [0, 0, 1, 1], [], []>} : vector<16x8xbf16>, vector<8x128xbf16>, vector<16x128xf32> -> vector<16x128xf32>
    %c0_5 = arith.constant 0 : index
    %c0_6 = arith.constant 0 : index
    %7 = vector.load %arg5[%c0_5, %c0_6] : memref<1x128xf32, #tpu.memory_space<vmem>>, vector<1x128xf32>
    %8 = vector.broadcast %7 : vector<1x128xf32> to vector<16x128xf32>
    %9 = arith.addf %6, %8 : vector<16x128xf32>
    %10 = vector.shape_cast %9 : vector<16x128xf32> to vector<8x2x128xf32>
    %c0_7 = arith.constant 0 : index
    %c0_8 = arith.constant 0 : index
    %c0_9 = arith.constant 0 : index
    %11 = vector.load %arg7[%c0_7, %c0_8, %c0_9] : memref<8x2x128xf32, #tpu.memory_space<vmem>>, vector<8x2x128xf32>
    tpu.vector_store %arg7[%c0_7, %c0_8, %c0_9], %10 {strides = array<i32>} : memref<8x2x128xf32, #tpu.memory_space<vmem>>, vector<8x2x128xf32>,
    %c0_10 = arith.constant 0 : index
    %c0_11 = arith.constant 0 : index
    %12 = vector.load %arg8[%c0_10, %c0_11] : memref<2x32xf32, #tpu.memory_space<vmem>>, vector<2x32xf32>
    %c0_12 = arith.constant 0 : index
    %c0_13 = arith.constant 0 : index
    %13 = vector.load %arg9[%c0_12, %c0_13] : memref<2x32xf32, #tpu.memory_space<vmem>>, vector<2x32xf32>
    %c0_i32_14 = arith.constant 0 : i32
    %14 = arith.index_cast %c0_i32_14 : i32 to index
    %c0_15 = arith.constant 0 : index
    %c0_16 = arith.constant 0 : index
    %15 = vector.load %arg7[%14, %c0_15, %c0_16] : memref<8x2x128xf32, #tpu.memory_space<vmem>>, vector<1x2x128xf32>
    %16 = vector.shape_cast %15 : vector<1x2x128xf32> to vector<2x128xf32>
    %17 = arith.truncf %12 : vector<2x32xf32> to vector<2x32xbf16>
    %c0_17 = arith.constant 0 : index
    %c0_18 = arith.constant 0 : index
    %18 = vector.load %arg4[%c0_17, %c0_18] : memref<32x128xbf16, #tpu.memory_space<vmem>>, vector<32x128xbf16>
    %cst_19 = arith.constant dense<0.000000e+00> : vector<2x128xf32>
    %19 = tpu.matmul %17, %18, %cst_19 {dimension_numbers = #tpu.dot_dimension_numbers<[1], [0], [0], [1], [0, 0, 1, 1], [], []>} : vector<2x32xbf16>, vector<32x128xbf16>, vector<2x128xf32> -> vector<2x128xf32>
    %20 = arith.addf %16, %19 : vector<2x128xf32>
    %21 = vector.extract_strided_slice %20 {offsets = [0, 0], sizes = [2, 32], strides = [1, 1]} : vector<2x128xf32> to vector<2x32xf32>
    %22 = arith.negf %21 : vector<2x32xf32>
    %23 = math.exp %22 : vector<2x32xf32>
    %cst_20 = arith.constant 1.000000e+00 : f32
    %24 = vector.broadcast %cst_20 : f32 to vector<2x32xf32>
    %25 = arith.addf %24, %23 : vector<2x32xf32>
    %26 = arith.divf %24, %25 : vector<2x32xf32>
    %27 = vector.extract_strided_slice %20 {offsets = [0, 32], sizes = [2, 32], strides = [1, 1]} : vector<2x128xf32> to vector<2x32xf32>
    %28 = arith.negf %27 : vector<2x32xf32>
    %29 = math.exp %28 : vector<2x32xf32>
    %cst_21 = arith.constant 1.000000e+00 : f32
    %30 = vector.broadcast %cst_21 : f32 to vector<2x32xf32>
    %31 = arith.addf %30, %29 : vector<2x32xf32>
    %32 = arith.divf %30, %31 : vector<2x32xf32>
    %33 = vector.extract_strided_slice %20 {offsets = [0, 64], sizes = [2, 32], strides = [1, 1]} : vector<2x128xf32> to vector<2x32xf32>
    %34 = math.tanh %33 : vector<2x32xf32>
    %35 = vector.extract_strided_slice %20 {offsets = [0, 96], sizes = [2, 32], strides = [1, 1]} : vector<2x128xf32> to vector<2x32xf32>
    %36 = arith.negf %35 : vector<2x32xf32>
    %37 = math.exp %36 : vector<2x32xf32>
    %cst_22 = arith.constant 1.000000e+00 : f32
    %38 = vector.broadcast %cst_22 : f32 to vector<2x32xf32>
    %39 = arith.addf %38, %37 : vector<2x32xf32>
    %40 = arith.divf %38, %39 : vector<2x32xf32>
    %41 = arith.mulf %32, %13 : vector<2x32xf32>
    %42 = arith.mulf %26, %34 : vector<2x32xf32>
    %43 = arith.addf %41, %42 : vector<2x32xf32>
    %44 = math.tanh %43 : vector<2x32xf32>
    %45 = arith.mulf %40, %44 : vector<2x32xf32>
    %46 = arith.truncf %45 : vector<2x32xf32> to vector<2x32xbf16>
    %47 = arith.index_cast %c0_i32_14 : i32 to index
    %c0_23 = arith.constant 0 : index
    %c0_24 = arith.constant 0 : index
    %48 = vector.load %arg6[%47, %c0_23, %c0_24] : memref<8x2x32xbf16, #tpu.memory_space<vmem>>, vector<1x2x32xbf16>
    %49 = vector.shape_cast %48 : vector<1x2x32xbf16> to vector<2x32xbf16>
    %50 = vector.shape_cast %46 : vector<2x32xbf16> to vector<1x2x32xbf16>
    tpu.vector_store %arg6[%47, %c0_23, %c0_24], %50 {strides = array<i32>} : memref<8x2x32xbf16, #tpu.memory_space<vmem>>, vector<1x2x32xbf16>,
    %c1_i32 = arith.constant 1 : i32
    %51 = arith.index_cast %c1_i32 : i32 to index
    %c0_25 = arith.constant 0 : index
    %c0_26 = arith.constant 0 : index
    %52 = vector.load %arg7[%51, %c0_25, %c0_26] : memref<8x2x128xf32, #tpu.memory_space<vmem>>, vector<1x2x128xf32>
    %53 = vector.shape_cast %52 : vector<1x2x128xf32> to vector<2x128xf32>
    %54 = arith.truncf %45 : vector<2x32xf32> to vector<2x32xbf16>
    %c0_27 = arith.constant 0 : index
    %c0_28 = arith.constant 0 : index
    %55 = vector.load %arg4[%c0_27, %c0_28] : memref<32x128xbf16, #tpu.memory_space<vmem>>, vector<32x128xbf16>
    %cst_29 = arith.constant dense<0.000000e+00> : vector<2x128xf32>
    %56 = tpu.matmul %54, %55, %cst_29 {dimension_numbers = #tpu.dot_dimension_numbers<[1], [0], [0], [1], [0, 0, 1, 1], [], []>} : vector<2x32xbf16>, vector<32x128xbf16>, vector<2x128xf32> -> vector<2x128xf32>
    %57 = arith.addf %53, %56 : vector<2x128xf32>
    %58 = vector.extract_strided_slice %57 {offsets = [0, 0], sizes = [2, 32], strides = [1, 1]} : vector<2x128xf32> to vector<2x32xf32>
    %59 = arith.negf %58 : vector<2x32xf32>
    %60 = math.exp %59 : vector<2x32xf32>
    %cst_30 = arith.constant 1.000000e+00 : f32
    %61 = vector.broadcast %cst_30 : f32 to vector<2x32xf32>
    %62 = arith.addf %61, %60 : vector<2x32xf32>
    %63 = arith.divf %61, %62 : vector<2x32xf32>
    %64 = vector.extract_strided_slice %57 {offsets = [0, 32], sizes = [2, 32], strides = [1, 1]} : vector<2x128xf32> to vector<2x32xf32>
    %65 = arith.negf %64 : vector<2x32xf32>
    %66 = math.exp %65 : vector<2x32xf32>
    %cst_31 = arith.constant 1.000000e+00 : f32
    %67 = vector.broadcast %cst_31 : f32 to vector<2x32xf32>
    %68 = arith.addf %67, %66 : vector<2x32xf32>
    %69 = arith.divf %67, %68 : vector<2x32xf32>
    %70 = vector.extract_strided_slice %57 {offsets = [0, 64], sizes = [2, 32], strides = [1, 1]} : vector<2x128xf32> to vector<2x32xf32>
    %71 = math.tanh %70 : vector<2x32xf32>
    %72 = vector.extract_strided_slice %57 {offsets = [0, 96], sizes = [2, 32], strides = [1, 1]} : vector<2x128xf32> to vector<2x32xf32>
    %73 = arith.negf %72 : vector<2x32xf32>
    %74 = math.exp %73 : vector<2x32xf32>
    %cst_32 = arith.constant 1.000000e+00 : f32
    %75 = vector.broadcast %cst_32 : f32 to vector<2x32xf32>
    %76 = arith.addf %75, %74 : vector<2x32xf32>
    %77 = arith.divf %75, %76 : vector<2x32xf32>
    %78 = arith.mulf %69, %43 : vector<2x32xf32>
    %79 = arith.mulf %63, %71 : vector<2x32xf32>
    %80 = arith.addf %78, %79 : vector<2x32xf32>
    %81 = math.tanh %80 : vector<2x32xf32>
    %82 = arith.mulf %77, %81 : vector<2x32xf32>
    %83 = arith.truncf %82 : vector<2x32xf32> to vector<2x32xbf16>
    %84 = arith.index_cast %c1_i32 : i32 to index
    %c0_33 = arith.constant 0 : index
    %c0_34 = arith.constant 0 : index
    %85 = vector.load %arg6[%84, %c0_33, %c0_34] : memref<8x2x32xbf16, #tpu.memory_space<vmem>>, vector<1x2x32xbf16>
    %86 = vector.shape_cast %85 : vector<1x2x32xbf16> to vector<2x32xbf16>
    %87 = vector.shape_cast %83 : vector<2x32xbf16> to vector<1x2x32xbf16>
    tpu.vector_store %arg6[%84, %c0_33, %c0_34], %87 {strides = array<i32>} : memref<8x2x32xbf16, #tpu.memory_space<vmem>>, vector<1x2x32xbf16>,
    %c2_i32 = arith.constant 2 : i32
    %88 = arith.index_cast %c2_i32 : i32 to index
    %c0_35 = arith.constant 0 : index
    %c0_36 = arith.constant 0 : index
    %89 = vector.load %arg7[%88, %c0_35, %c0_36] : memref<8x2x128xf32, #tpu.memory_space<vmem>>, vector<1x2x128xf32>
    %90 = vector.shape_cast %89 : vector<1x2x128xf32> to vector<2x128xf32>
    %91 = arith.truncf %82 : vector<2x32xf32> to vector<2x32xbf16>
    %c0_37 = arith.constant 0 : index
    %c0_38 = arith.constant 0 : index
    %92 = vector.load %arg4[%c0_37, %c0_38] : memref<32x128xbf16, #tpu.memory_space<vmem>>, vector<32x128xbf16>
    %cst_39 = arith.constant dense<0.000000e+00> : vector<2x128xf32>
    %93 = tpu.matmul %91, %92, %cst_39 {dimension_numbers = #tpu.dot_dimension_numbers<[1], [0], [0], [1], [0, 0, 1, 1], [], []>} : vector<2x32xbf16>, vector<32x128xbf16>, vector<2x128xf32> -> vector<2x128xf32>
    %94 = arith.addf %90, %93 : vector<2x128xf32>
    %95 = vector.extract_strided_slice %94 {offsets = [0, 0], sizes = [2, 32], strides = [1, 1]} : vector<2x128xf32> to vector<2x32xf32>
    %96 = arith.negf %95 : vector<2x32xf32>
    %97 = math.exp %96 : vector<2x32xf32>
    %cst_40 = arith.constant 1.000000e+00 : f32
    %98 = vector.broadcast %cst_40 : f32 to vector<2x32xf32>
    %99 = arith.addf %98, %97 : vector<2x32xf32>
    %100 = arith.divf %98, %99 : vector<2x32xf32>
    %101 = vector.extract_strided_slice %94 {offsets = [0, 32], sizes = [2, 32], strides = [1, 1]} : vector<2x128xf32> to vector<2x32xf32>
    %102 = arith.negf %101 : vector<2x32xf32>
    %103 = math.exp %102 : vector<2x32xf32>
    %cst_41 = arith.constant 1.000000e+00 : f32
    %104 = vector.broadcast %cst_41 : f32 to vector<2x32xf32>
    %105 = arith.addf %104, %103 : vector<2x32xf32>
    %106 = arith.divf %104, %105 : vector<2x32xf32>
    %107 = vector.extract_strided_slice %94 {offsets = [0, 64], sizes = [2, 32], strides = [1, 1]} : vector<2x128xf32> to vector<2x32xf32>
    %108 = math.tanh %107 : vector<2x32xf32>
    %109 = vector.extract_strided_slice %94 {offsets = [0, 96], sizes = [2, 32], strides = [1, 1]} : vector<2x128xf32> to vector<2x32xf32>
    %110 = arith.negf %109 : vector<2x32xf32>
    %111 = math.exp %110 : vector<2x32xf32>
    %cst_42 = arith.constant 1.000000e+00 : f32
    %112 = vector.broadcast %cst_42 : f32 to vector<2x32xf32>
    %113 = arith.addf %112, %111 : vector<2x32xf32>
    %114 = arith.divf %112, %113 : vector<2x32xf32>
    %115 = arith.mulf %106, %80 : vector<2x32xf32>
    %116 = arith.mulf %100, %108 : vector<2x32xf32>
    %117 = arith.addf %115, %116 : vector<2x32xf32>
    %118 = math.tanh %117 : vector<2x32xf32>
    %119 = arith.mulf %114, %118 : vector<2x32xf32>
    %120 = arith.truncf %119 : vector<2x32xf32> to vector<2x32xbf16>
    %121 = arith.index_cast %c2_i32 : i32 to index
    %c0_43 = arith.constant 0 : index
    %c0_44 = arith.constant 0 : index
    %122 = vector.load %arg6[%121, %c0_43, %c0_44] : memref<8x2x32xbf16, #tpu.memory_space<vmem>>, vector<1x2x32xbf16>
    %123 = vector.shape_cast %122 : vector<1x2x32xbf16> to vector<2x32xbf16>
    %124 = vector.shape_cast %120 : vector<2x32xbf16> to vector<1x2x32xbf16>
    tpu.vector_store %arg6[%121, %c0_43, %c0_44], %124 {strides = array<i32>} : memref<8x2x32xbf16, #tpu.memory_space<vmem>>, vector<1x2x32xbf16>,
    %c3_i32 = arith.constant 3 : i32
    %125 = arith.index_cast %c3_i32 : i32 to index
    %c0_45 = arith.constant 0 : index
    %c0_46 = arith.constant 0 : index
    %126 = vector.load %arg7[%125, %c0_45, %c0_46] : memref<8x2x128xf32, #tpu.memory_space<vmem>>, vector<1x2x128xf32>
    %127 = vector.shape_cast %126 : vector<1x2x128xf32> to vector<2x128xf32>
    %128 = arith.truncf %119 : vector<2x32xf32> to vector<2x32xbf16>
    %c0_47 = arith.constant 0 : index
    %c0_48 = arith.constant 0 : index
    %129 = vector.load %arg4[%c0_47, %c0_48] : memref<32x128xbf16, #tpu.memory_space<vmem>>, vector<32x128xbf16>
    %cst_49 = arith.constant dense<0.000000e+00> : vector<2x128xf32>
    %130 = tpu.matmul %128, %129, %cst_49 {dimension_numbers = #tpu.dot_dimension_numbers<[1], [0], [0], [1], [0, 0, 1, 1], [], []>} : vector<2x32xbf16>, vector<32x128xbf16>, vector<2x128xf32> -> vector<2x128xf32>
    %131 = arith.addf %127, %130 : vector<2x128xf32>
    %132 = vector.extract_strided_slice %131 {offsets = [0, 0], sizes = [2, 32], strides = [1, 1]} : vector<2x128xf32> to vector<2x32xf32>
    %133 = arith.negf %132 : vector<2x32xf32>
    %134 = math.exp %133 : vector<2x32xf32>
    %cst_50 = arith.constant 1.000000e+00 : f32
    %135 = vector.broadcast %cst_50 : f32 to vector<2x32xf32>
    %136 = arith.addf %135, %134 : vector<2x32xf32>
    %137 = arith.divf %135, %136 : vector<2x32xf32>
    %138 = vector.extract_strided_slice %131 {offsets = [0, 32], sizes = [2, 32], strides = [1, 1]} : vector<2x128xf32> to vector<2x32xf32>
    %139 = arith.negf %138 : vector<2x32xf32>
    %140 = math.exp %139 : vector<2x32xf32>
    %cst_51 = arith.constant 1.000000e+00 : f32
    %141 = vector.broadcast %cst_51 : f32 to vector<2x32xf32>
    %142 = arith.addf %141, %140 : vector<2x32xf32>
    %143 = arith.divf %141, %142 : vector<2x32xf32>
    %144 = vector.extract_strided_slice %131 {offsets = [0, 64], sizes = [2, 32], strides = [1, 1]} : vector<2x128xf32> to vector<2x32xf32>
    %145 = math.tanh %144 : vector<2x32xf32>
    %146 = vector.extract_strided_slice %131 {offsets = [0, 96], sizes = [2, 32], strides = [1, 1]} : vector<2x128xf32> to vector<2x32xf32>
    %147 = arith.negf %146 : vector<2x32xf32>
    %148 = math.exp %147 : vector<2x32xf32>
    %cst_52 = arith.constant 1.000000e+00 : f32
    %149 = vector.broadcast %cst_52 : f32 to vector<2x32xf32>
    %150 = arith.addf %149, %148 : vector<2x32xf32>
    %151 = arith.divf %149, %150 : vector<2x32xf32>
    %152 = arith.mulf %143, %117 : vector<2x32xf32>
    %153 = arith.mulf %137, %145 : vector<2x32xf32>
    %154 = arith.addf %152, %153 : vector<2x32xf32>
    %155 = math.tanh %154 : vector<2x32xf32>
    %156 = arith.mulf %151, %155 : vector<2x32xf32>
    %157 = arith.truncf %156 : vector<2x32xf32> to vector<2x32xbf16>
    %158 = arith.index_cast %c3_i32 : i32 to index
    %c0_53 = arith.constant 0 : index
    %c0_54 = arith.constant 0 : index
    %159 = vector.load %arg6[%158, %c0_53, %c0_54] : memref<8x2x32xbf16, #tpu.memory_space<vmem>>, vector<1x2x32xbf16>
    %160 = vector.shape_cast %159 : vector<1x2x32xbf16> to vector<2x32xbf16>
    %161 = vector.shape_cast %157 : vector<2x32xbf16> to vector<1x2x32xbf16>
    tpu.vector_store %arg6[%158, %c0_53, %c0_54], %161 {strides = array<i32>} : memref<8x2x32xbf16, #tpu.memory_space<vmem>>, vector<1x2x32xbf16>,
    %c4_i32 = arith.constant 4 : i32
    %162 = arith.index_cast %c4_i32 : i32 to index
    %c0_55 = arith.constant 0 : index
    %c0_56 = arith.constant 0 : index
    %163 = vector.load %arg7[%162, %c0_55, %c0_56] : memref<8x2x128xf32, #tpu.memory_space<vmem>>, vector<1x2x128xf32>
    %164 = vector.shape_cast %163 : vector<1x2x128xf32> to vector<2x128xf32>
    %165 = arith.truncf %156 : vector<2x32xf32> to vector<2x32xbf16>
    %c0_57 = arith.constant 0 : index
    %c0_58 = arith.constant 0 : index
    %166 = vector.load %arg4[%c0_57, %c0_58] : memref<32x128xbf16, #tpu.memory_space<vmem>>, vector<32x128xbf16>
    %cst_59 = arith.constant dense<0.000000e+00> : vector<2x128xf32>
    %167 = tpu.matmul %165, %166, %cst_59 {dimension_numbers = #tpu.dot_dimension_numbers<[1], [0], [0], [1], [0, 0, 1, 1], [], []>} : vector<2x32xbf16>, vector<32x128xbf16>, vector<2x128xf32> -> vector<2x128xf32>
    %168 = arith.addf %164, %167 : vector<2x128xf32>
    %169 = vector.extract_strided_slice %168 {offsets = [0, 0], sizes = [2, 32], strides = [1, 1]} : vector<2x128xf32> to vector<2x32xf32>
    %170 = arith.negf %169 : vector<2x32xf32>
    %171 = math.exp %170 : vector<2x32xf32>
    %cst_60 = arith.constant 1.000000e+00 : f32
    %172 = vector.broadcast %cst_60 : f32 to vector<2x32xf32>
    %173 = arith.addf %172, %171 : vector<2x32xf32>
    %174 = arith.divf %172, %173 : vector<2x32xf32>
    %175 = vector.extract_strided_slice %168 {offsets = [0, 32], sizes = [2, 32], strides = [1, 1]} : vector<2x128xf32> to vector<2x32xf32>
    %176 = arith.negf %175 : vector<2x32xf32>
    %177 = math.exp %176 : vector<2x32xf32>
    %cst_61 = arith.constant 1.000000e+00 : f32
    %178 = vector.broadcast %cst_61 : f32 to vector<2x32xf32>
    %179 = arith.addf %178, %177 : vector<2x32xf32>
    %180 = arith.divf %178, %179 : vector<2x32xf32>
    %181 = vector.extract_strided_slice %168 {offsets = [0, 64], sizes = [2, 32], strides = [1, 1]} : vector<2x128xf32> to vector<2x32xf32>
    %182 = math.tanh %181 : vector<2x32xf32>
    %183 = vector.extract_strided_slice %168 {offsets = [0, 96], sizes = [2, 32], strides = [1, 1]} : vector<2x128xf32> to vector<2x32xf32>
    %184 = arith.negf %183 : vector<2x32xf32>
    %185 = math.exp %184 : vector<2x32xf32>
    %cst_62 = arith.constant 1.000000e+00 : f32
    %186 = vector.broadcast %cst_62 : f32 to vector<2x32xf32>
    %187 = arith.addf %186, %185 : vector<2x32xf32>
    %188 = arith.divf %186, %187 : vector<2x32xf32>
    %189 = arith.mulf %180, %154 : vector<2x32xf32>
    %190 = arith.mulf %174, %182 : vector<2x32xf32>
    %191 = arith.addf %189, %190 : vector<2x32xf32>
    %192 = math.tanh %191 : vector<2x32xf32>
    %193 = arith.mulf %188, %192 : vector<2x32xf32>
    %194 = arith.truncf %193 : vector<2x32xf32> to vector<2x32xbf16>
    %195 = arith.index_cast %c4_i32 : i32 to index
    %c0_63 = arith.constant 0 : index
    %c0_64 = arith.constant 0 : index
    %196 = vector.load %arg6[%195, %c0_63, %c0_64] : memref<8x2x32xbf16, #tpu.memory_space<vmem>>, vector<1x2x32xbf16>
    %197 = vector.shape_cast %196 : vector<1x2x32xbf16> to vector<2x32xbf16>
    %198 = vector.shape_cast %194 : vector<2x32xbf16> to vector<1x2x32xbf16>
    tpu.vector_store %arg6[%195, %c0_63, %c0_64], %198 {strides = array<i32>} : memref<8x2x32xbf16, #tpu.memory_space<vmem>>, vector<1x2x32xbf16>,
    %c5_i32 = arith.constant 5 : i32
    %199 = arith.index_cast %c5_i32 : i32 to index
    %c0_65 = arith.constant 0 : index
    %c0_66 = arith.constant 0 : index
    %200 = vector.load %arg7[%199, %c0_65, %c0_66] : memref<8x2x128xf32, #tpu.memory_space<vmem>>, vector<1x2x128xf32>
    %201 = vector.shape_cast %200 : vector<1x2x128xf32> to vector<2x128xf32>
    %202 = arith.truncf %193 : vector<2x32xf32> to vector<2x32xbf16>
    %c0_67 = arith.constant 0 : index
    %c0_68 = arith.constant 0 : index
    %203 = vector.load %arg4[%c0_67, %c0_68] : memref<32x128xbf16, #tpu.memory_space<vmem>>, vector<32x128xbf16>
    %cst_69 = arith.constant dense<0.000000e+00> : vector<2x128xf32>
    %204 = tpu.matmul %202, %203, %cst_69 {dimension_numbers = #tpu.dot_dimension_numbers<[1], [0], [0], [1], [0, 0, 1, 1], [], []>} : vector<2x32xbf16>, vector<32x128xbf16>, vector<2x128xf32> -> vector<2x128xf32>
    %205 = arith.addf %201, %204 : vector<2x128xf32>
    %206 = vector.extract_strided_slice %205 {offsets = [0, 0], sizes = [2, 32], strides = [1, 1]} : vector<2x128xf32> to vector<2x32xf32>
    %207 = arith.negf %206 : vector<2x32xf32>
    %208 = math.exp %207 : vector<2x32xf32>
    %cst_70 = arith.constant 1.000000e+00 : f32
    %209 = vector.broadcast %cst_70 : f32 to vector<2x32xf32>
    %210 = arith.addf %209, %208 : vector<2x32xf32>
    %211 = arith.divf %209, %210 : vector<2x32xf32>
    %212 = vector.extract_strided_slice %205 {offsets = [0, 32], sizes = [2, 32], strides = [1, 1]} : vector<2x128xf32> to vector<2x32xf32>
    %213 = arith.negf %212 : vector<2x32xf32>
    %214 = math.exp %213 : vector<2x32xf32>
    %cst_71 = arith.constant 1.000000e+00 : f32
    %215 = vector.broadcast %cst_71 : f32 to vector<2x32xf32>
    %216 = arith.addf %215, %214 : vector<2x32xf32>
    %217 = arith.divf %215, %216 : vector<2x32xf32>
    %218 = vector.extract_strided_slice %205 {offsets = [0, 64], sizes = [2, 32], strides = [1, 1]} : vector<2x128xf32> to vector<2x32xf32>
    %219 = math.tanh %218 : vector<2x32xf32>
    %220 = vector.extract_strided_slice %205 {offsets = [0, 96], sizes = [2, 32], strides = [1, 1]} : vector<2x128xf32> to vector<2x32xf32>
    %221 = arith.negf %220 : vector<2x32xf32>
    %222 = math.exp %221 : vector<2x32xf32>
    %cst_72 = arith.constant 1.000000e+00 : f32
    %223 = vector.broadcast %cst_72 : f32 to vector<2x32xf32>
    %224 = arith.addf %223, %222 : vector<2x32xf32>
    %225 = arith.divf %223, %224 : vector<2x32xf32>
    %226 = arith.mulf %217, %191 : vector<2x32xf32>
    %227 = arith.mulf %211, %219 : vector<2x32xf32>
    %228 = arith.addf %226, %227 : vector<2x32xf32>
    %229 = math.tanh %228 : vector<2x32xf32>
    %230 = arith.mulf %225, %229 : vector<2x32xf32>
    %231 = arith.truncf %230 : vector<2x32xf32> to vector<2x32xbf16>
    %232 = arith.index_cast %c5_i32 : i32 to index
    %c0_73 = arith.constant 0 : index
    %c0_74 = arith.constant 0 : index
    %233 = vector.load %arg6[%232, %c0_73, %c0_74] : memref<8x2x32xbf16, #tpu.memory_space<vmem>>, vector<1x2x32xbf16>
    %234 = vector.shape_cast %233 : vector<1x2x32xbf16> to vector<2x32xbf16>
    %235 = vector.shape_cast %231 : vector<2x32xbf16> to vector<1x2x32xbf16>
    tpu.vector_store %arg6[%232, %c0_73, %c0_74], %235 {strides = array<i32>} : memref<8x2x32xbf16, #tpu.memory_space<vmem>>, vector<1x2x32xbf16>,
    %c6_i32 = arith.constant 6 : i32
    %236 = arith.index_cast %c6_i32 : i32 to index
    %c0_75 = arith.constant 0 : index
    %c0_76 = arith.constant 0 : index
    %237 = vector.load %arg7[%236, %c0_75, %c0_76] : memref<8x2x128xf32, #tpu.memory_space<vmem>>, vector<1x2x128xf32>
    %238 = vector.shape_cast %237 : vector<1x2x128xf32> to vector<2x128xf32>
    %239 = arith.truncf %230 : vector<2x32xf32> to vector<2x32xbf16>
    %c0_77 = arith.constant 0 : index
    %c0_78 = arith.constant 0 : index
    %240 = vector.load %arg4[%c0_77, %c0_78] : memref<32x128xbf16, #tpu.memory_space<vmem>>, vector<32x128xbf16>
    %cst_79 = arith.constant dense<0.000000e+00> : vector<2x128xf32>
    %241 = tpu.matmul %239, %240, %cst_79 {dimension_numbers = #tpu.dot_dimension_numbers<[1], [0], [0], [1], [0, 0, 1, 1], [], []>} : vector<2x32xbf16>, vector<32x128xbf16>, vector<2x128xf32> -> vector<2x128xf32>
    %242 = arith.addf %238, %241 : vector<2x128xf32>
    %243 = vector.extract_strided_slice %242 {offsets = [0, 0], sizes = [2, 32], strides = [1, 1]} : vector<2x128xf32> to vector<2x32xf32>
    %244 = arith.negf %243 : vector<2x32xf32>
    %245 = math.exp %244 : vector<2x32xf32>
    %cst_80 = arith.constant 1.000000e+00 : f32
    %246 = vector.broadcast %cst_80 : f32 to vector<2x32xf32>
    %247 = arith.addf %246, %245 : vector<2x32xf32>
    %248 = arith.divf %246, %247 : vector<2x32xf32>
    %249 = vector.extract_strided_slice %242 {offsets = [0, 32], sizes = [2, 32], strides = [1, 1]} : vector<2x128xf32> to vector<2x32xf32>
    %250 = arith.negf %249 : vector<2x32xf32>
    %251 = math.exp %250 : vector<2x32xf32>
    %cst_81 = arith.constant 1.000000e+00 : f32
    %252 = vector.broadcast %cst_81 : f32 to vector<2x32xf32>
    %253 = arith.addf %252, %251 : vector<2x32xf32>
    %254 = arith.divf %252, %253 : vector<2x32xf32>
    %255 = vector.extract_strided_slice %242 {offsets = [0, 64], sizes = [2, 32], strides = [1, 1]} : vector<2x128xf32> to vector<2x32xf32>
    %256 = math.tanh %255 : vector<2x32xf32>
    %257 = vector.extract_strided_slice %242 {offsets = [0, 96], sizes = [2, 32], strides = [1, 1]} : vector<2x128xf32> to vector<2x32xf32>
    %258 = arith.negf %257 : vector<2x32xf32>
    %259 = math.exp %258 : vector<2x32xf32>
    %cst_82 = arith.constant 1.000000e+00 : f32
    %260 = vector.broadcast %cst_82 : f32 to vector<2x32xf32>
    %261 = arith.addf %260, %259 : vector<2x32xf32>
    %262 = arith.divf %260, %261 : vector<2x32xf32>
    %263 = arith.mulf %254, %228 : vector<2x32xf32>
    %264 = arith.mulf %248, %256 : vector<2x32xf32>
    %265 = arith.addf %263, %264 : vector<2x32xf32>
    %266 = math.tanh %265 : vector<2x32xf32>
    %267 = arith.mulf %262, %266 : vector<2x32xf32>
    %268 = arith.truncf %267 : vector<2x32xf32> to vector<2x32xbf16>
    %269 = arith.index_cast %c6_i32 : i32 to index
    %c0_83 = arith.constant 0 : index
    %c0_84 = arith.constant 0 : index
    %270 = vector.load %arg6[%269, %c0_83, %c0_84] : memref<8x2x32xbf16, #tpu.memory_space<vmem>>, vector<1x2x32xbf16>
    %271 = vector.shape_cast %270 : vector<1x2x32xbf16> to vector<2x32xbf16>
    %272 = vector.shape_cast %268 : vector<2x32xbf16> to vector<1x2x32xbf16>
    tpu.vector_store %arg6[%269, %c0_83, %c0_84], %272 {strides = array<i32>} : memref<8x2x32xbf16, #tpu.memory_space<vmem>>, vector<1x2x32xbf16>,
    %c7_i32 = arith.constant 7 : i32
    %273 = arith.index_cast %c7_i32 : i32 to index
    %c0_85 = arith.constant 0 : index
    %c0_86 = arith.constant 0 : index
    %274 = vector.load %arg7[%273, %c0_85, %c0_86] : memref<8x2x128xf32, #tpu.memory_space<vmem>>, vector<1x2x128xf32>
    %275 = vector.shape_cast %274 : vector<1x2x128xf32> to vector<2x128xf32>
    %276 = arith.truncf %267 : vector<2x32xf32> to vector<2x32xbf16>
    %c0_87 = arith.constant 0 : index
    %c0_88 = arith.constant 0 : index
    %277 = vector.load %arg4[%c0_87, %c0_88] : memref<32x128xbf16, #tpu.memory_space<vmem>>, vector<32x128xbf16>
    %cst_89 = arith.constant dense<0.000000e+00> : vector<2x128xf32>
    %278 = tpu.matmul %276, %277, %cst_89 {dimension_numbers = #tpu.dot_dimension_numbers<[1], [0], [0], [1], [0, 0, 1, 1], [], []>} : vector<2x32xbf16>, vector<32x128xbf16>, vector<2x128xf32> -> vector<2x128xf32>
    %279 = arith.addf %275, %278 : vector<2x128xf32>
    %280 = vector.extract_strided_slice %279 {offsets = [0, 0], sizes = [2, 32], strides = [1, 1]} : vector<2x128xf32> to vector<2x32xf32>
    %281 = arith.negf %280 : vector<2x32xf32>
    %282 = math.exp %281 : vector<2x32xf32>
    %cst_90 = arith.constant 1.000000e+00 : f32
    %283 = vector.broadcast %cst_90 : f32 to vector<2x32xf32>
    %284 = arith.addf %283, %282 : vector<2x32xf32>
    %285 = arith.divf %283, %284 : vector<2x32xf32>
    %286 = vector.extract_strided_slice %279 {offsets = [0, 32], sizes = [2, 32], strides = [1, 1]} : vector<2x128xf32> to vector<2x32xf32>
    %287 = arith.negf %286 : vector<2x32xf32>
    %288 = math.exp %287 : vector<2x32xf32>
    %cst_91 = arith.constant 1.000000e+00 : f32
    %289 = vector.broadcast %cst_91 : f32 to vector<2x32xf32>
    %290 = arith.addf %289, %288 : vector<2x32xf32>
    %291 = arith.divf %289, %290 : vector<2x32xf32>
    %292 = vector.extract_strided_slice %279 {offsets = [0, 64], sizes = [2, 32], strides = [1, 1]} : vector<2x128xf32> to vector<2x32xf32>
    %293 = math.tanh %292 : vector<2x32xf32>
    %294 = vector.extract_strided_slice %279 {offsets = [0, 96], sizes = [2, 32], strides = [1, 1]} : vector<2x128xf32> to vector<2x32xf32>
    %295 = arith.negf %294 : vector<2x32xf32>
    %296 = math.exp %295 : vector<2x32xf32>
    %cst_92 = arith.constant 1.000000e+00 : f32
    %297 = vector.broadcast %cst_92 : f32 to vector<2x32xf32>
    %298 = arith.addf %297, %296 : vector<2x32xf32>
    %299 = arith.divf %297, %298 : vector<2x32xf32>
    %300 = arith.mulf %291, %265 : vector<2x32xf32>
    %301 = arith.mulf %285, %293 : vector<2x32xf32>
    %302 = arith.addf %300, %301 : vector<2x32xf32>
    %303 = math.tanh %302 : vector<2x32xf32>
    %304 = arith.mulf %299, %303 : vector<2x32xf32>
    %305 = arith.truncf %304 : vector<2x32xf32> to vector<2x32xbf16>
    %306 = arith.index_cast %c7_i32 : i32 to index
    %c0_93 = arith.constant 0 : index
    %c0_94 = arith.constant 0 : index
    %307 = vector.load %arg6[%306, %c0_93, %c0_94] : memref<8x2x32xbf16, #tpu.memory_space<vmem>>, vector<1x2x32xbf16>
    %308 = vector.shape_cast %307 : vector<1x2x32xbf16> to vector<2x32xbf16>
    %309 = vector.shape_cast %305 : vector<2x32xbf16> to vector<1x2x32xbf16>
    tpu.vector_store %arg6[%306, %c0_93, %c0_94], %309 {strides = array<i32>} : memref<8x2x32xbf16, #tpu.memory_space<vmem>>, vector<1x2x32xbf16>,
    %c8_i32 = arith.constant 8 : i32
    %c0_95 = arith.constant 0 : index
    %c0_96 = arith.constant 0 : index
    %310 = vector.load %arg8[%c0_95, %c0_96] : memref<2x32xf32, #tpu.memory_space<vmem>>, vector<2x32xf32>
    tpu.vector_store %arg8[%c0_95, %c0_96], %304 {strides = array<i32>} : memref<2x32xf32, #tpu.memory_space<vmem>>, vector<2x32xf32>,
    %c0_97 = arith.constant 0 : index
    %c0_98 = arith.constant 0 : index
    %311 = vector.load %arg9[%c0_97, %c0_98] : memref<2x32xf32, #tpu.memory_space<vmem>>, vector<2x32xf32>
    tpu.vector_store %arg9[%c0_97, %c0_98], %302 {strides = array<i32>} : memref<2x32xf32, #tpu.memory_space<vmem>>, vector<2x32xf32>,
    return
  }
  func.func @transform_0(%arg0: i32, %arg1: i32) -> (i32, i32, i32) {
    %c0_i32 = arith.constant 0 : i32
    %c0_i32_0 = arith.constant 0 : i32
    return %arg1, %arg0, %c0_i32 : i32, i32, i32
  }
  func.func @transform_1(%arg0: i32, %arg1: i32) -> (i32, i32) {
    %c0_i32 = arith.constant 0 : i32
    %c0_i32_0 = arith.constant 0 : i32
    %c0_i32_1 = arith.constant 0 : i32
    return %c0_i32, %c0_i32_0 : i32, i32
  }
  func.func @transform_2(%arg0: i32, %arg1: i32) -> (i32, i32) {
    %c0_i32 = arith.constant 0 : i32
    %c0_i32_0 = arith.constant 0 : i32
    %c0_i32_1 = arith.constant 0 : i32
    return %c0_i32, %c0_i32_0 : i32, i32
  }
  func.func @transform_3(%arg0: i32, %arg1: i32) -> (i32, i32) {
    %c0_i32 = arith.constant 0 : i32
    %c0_i32_0 = arith.constant 0 : i32
    %c0_i32_1 = arith.constant 0 : i32
    return %c0_i32, %c0_i32_0 : i32, i32
  }
  func.func @transform_4(%arg0: i32, %arg1: i32) -> (i32, i32, i32) {
    %c0_i32 = arith.constant 0 : i32
    %c0_i32_0 = arith.constant 0 : i32
    return %arg1, %arg0, %c0_i32 : i32, i32, i32
  }
}

</mosaic_0001>

<bundles_post_ra>
// kernel: rnn_model_forward.3
= control target key start
LH: loop header
LB: loop body
LE: loop exit
PB: predicated region body
PF: predicated region fallthrough
CT: control target
= control target key end

     0   :  { %v1169_v1 = vmov 0.0   ;;  %v66_v3 = vlaneseq  ;;  %vm1170_vm0 = vmmov 0   ;;  %v1171_v12 = vmov 1966171168   ;;  %s1382_s0 = inlined_call_operand.vmem [shape: bf16[8,2,32], index: 0, kind: input, shape index: {}]   ;;  %s1383_s1 = inlined_call_operand.vmem [shape: bf16[32,128], index: 1, kind: input, shape index: {}]   ;;  %s1384_s2 = inlined_call_operand.vmem [shape: bf16[32,128], index: 2, kind: input, shape index: {}]   ;;  %s1385_s3 = inlined_call_operand.vmem [shape: f32[1,128], index: 3, kind: input, shape index: {}]   ;;  %s1386_s4 = inlined_call_operand.vmem [shape: bf16[32,4], index: 4, kind: input, shape index: {}]   ;;  %s1387_s5 = inlined_call_operand.vmem [shape: f32[1,4], index: 5, kind: input, shape index: {}]   ;;  %s1388_s6 = inlined_call_operand.hbm [shape: f32[2,4], index: 6, kind: output, shape index: {}]  }
   0x1   :  { %v1075_v0 = vld [vmem:[%s1383_s1] sm:$0xff]   ;;  %987 = vmatprep.subr.bf16.mxu0 %v1169_v1  ;;  %v1076_v2 = vld [vmem:[%s1383_s1 + $0x8] sm:$0xff]   ;;  %995 = vmatprep.subr.bf16.mxu1 %v1169_v1  ;;  %v64_v13 = vunpack.c.l.s4 %v1171_v12  ;;  %vm29_vm1 = vcmask 254976  }
   0x2   :  { %988 = vmatpush3.bf16.msra.mxu0 %v1075_v0  ;;  %991 = vmatprep.mubr.msk.bf16.mxu0 %vm1170_vm0, %v1169_v1  ;;  %v32_v4 = vld [vmem:[%s1382_s0] sm:$0x1]  ;;  %v33_v5 = vld [vmem:[%s1382_s0 + $0x1] sm:$0x1]  ;;  %v34_v6 = vld [vmem:[%s1382_s0 + $0x2] sm:$0x1] }
   0x3   :  { %989 = vmatprep.subr.bf16.mxu0 %v1169_v1  ;;  %v35_v7 = vld [vmem:[%s1382_s0 + $0x3] sm:$0x1]  ;;  %v36_v8 = vld [vmem:[%s1382_s0 + $0x4] sm:$0x1]  ;;  %v37_v9 = vld [vmem:[%s1382_s0 + $0x5] sm:$0x1]  ;;  %999 = vmatprep.mubr.msk.bf16.mxu1 %vm1170_vm0, %v1169_v1  ;;  %v59_v15 = vcombine.low %v32_v4, %v33_v5  ;;  %v65_v20 = vunpack.c.0.s8 %v64_v13 }
   0x4   :  { %v38_v10 = vld [vmem:[%s1382_s0 + $0x6] sm:$0x1]  ;;  %v39_v11 = vld [vmem:[%s1382_s0 + $0x7] sm:$0x1]  ;;  %v67_v14 = vshrl.u32 %v66_v3, 7  ;;  %v60_v17 = vcombine.low %v34_v6, %v35_v7  ;;  %v61_v18 = vcombine.low %v36_v8, %v37_v9  ;;  %v1257_v21 = vld [vmem:[%s1384_s2 + $0x8] sm:$0xff]  }
   0x5   :  { %v1252_v16 = vld [vmem:[%s1384_s2] sm:$0xff]   ;;  %v62_v19 = vcombine.low %v38_v10, %v39_v11  ;;  %30 = vst.msk [vmem:[#allocation3] sm:$0x3] %vm29_vm1, %v1169_v1  ;;  %31 = vst.msk [vmem:[#allocation4] sm:$0x3] %vm29_vm1, %v1169_v1 }
   0x6   :  { %990 = vmatpush3.bf16.msra.mxu0 %v1076_v2  ;;  %996 = vmatpush3.bf16.msra.mxu1 %v1252_v16  ;;  %v68_v22 = vsub.s32 %v65_v20, %v67_v14 }
   0x7   :  { %1003 = vmatprep.subr.bf16.mxu0 %v1169_v1  ;;  %997 = vmatprep.subr.bf16.mxu1 %v1169_v1 }
   0x8   :  { %11 = vsyncpa [#allocation6], 0  ;;  %v69_v23 = vrot.slane %v59_v15, %v68_v22  ;;  %v76_v24 = vrot.slane %v60_v17, %v68_v22  ;;  %v83_v25 = vrot.slane %v61_v18, %v68_v22  ;;  %v90_v26 = vrot.slane %v62_v19, %v68_v22  ;;  %v927_v37 = vld [vmem:[%s1385_s3] ss:$0 sm:$0xff]  ;;  %s1173_s3 = smov 64   ;;  %s1174_s20 = smov 32  }
   0x9   :  { %vm120_vm2 = vcmask 261120   ;;  %v1172_v34 = vmov 1983009808   ;;  %s1175_s25 = smov 96   ;;  %s1176_s27 = smov [#allocation5]   ;;  %vm911_vm3 = vcmask 25600  }
   0xa   :  { %998 = vmatpush3.bf16.msra.mxu1 %v1257_v21  ;;  %v91_v27 = vcombine.low %v69_v23, %v76_v24  ;;  %v92_v28 = vcombine.low %v83_v25, %v90_v26  ;;  %v169_v35 = vunpack.c.l.s4 %v1172_v34  ;;  %s919_s28 = sshll.u32 %s1176_s27, 4  ;;  %s920_s28 = int_to_ptr.vmem [resolvable:$true] %s919_s28 }
   0xb   :  { %1011 = vmatprep.subr.bf16.mxu1 %v1169_v1  ;;  %s1145_s29 = scalar_lea.vmem %s920_s28, 32  ;;  %p1150_p1 = scmp.lt.s32.totalorder %s920_s28, %s920_s28 }
   0xc   :  { %v217_v29 = vld [vmem:[#allocation3] sm:$0x3]  ;;  %v99_v30 = vrot.slane %v91_v27, %v68_v22  ;;  %v106_v31 = vrot.slane %v92_v28, %v68_v22  ;;  %v170_v36 = vunpack.c.0.s8 %v169_v35  ;;  %v218_v62 = vld [vmem:[#allocation4] sm:$0x3]  ;;  %p1146_p0 = scmp.ne.s32.totalorder %s920_s28, %s1145_s29  ;;  %p1151_p2 = scmp.lt.s32.totalorder %s1145_s29, %s1145_s29 }
   0xd   :  { %v220_v32 = vpack.c.bf16 %v217_v29, %v217_v29 }
   0xe   :  { %v107_v33 = vcombine.low %v99_v30, %v106_v31  ;;  %v173_v39 = vsub.s32 %v170_v36, %v67_v14  ;;  %p1152_p3 = por %p1151_p2, %p1150_p1 }
   0xf   :  { %1000 = vmatmul.mubr.msk.bf16.vlgmr.msra.gmra.mrb[0].mxu1 %vm120_vm2, %v220_v32 }
  0x10   :  { %1012 = vmatpush3.bf16.msra.mxu1 %v1252_v16  ;;  %1015 = vmatprep.mubr.msk.bf16.mxu1 %vm1170_vm0, %v1169_v1  ;;  %p1153_p4 = pnand %p1152_p3, %p1146_p0 }
  0x11   :  { %992 = vmatmul.mubr.msk.bf16.vlgmr.msra.gmra.mrb[0].mxu0 %vm120_vm2, %v107_v33  ;;  %1013 = vmatprep.subr.bf16.mxu1 %v1169_v1 }
  0x12   :  { %1004 = vmatpush3.bf16.msra.mxu0 %v1252_v16  ;;  %1007 = vmatprep.mubr.msk.bf16.mxu0 %vm1170_vm0, %v1169_v1 }
  0x13   :  { %1005 = vmatprep.subr.bf16.mxu0 %v1169_v1 }
  0x14   :  { %1014 = vmatpush3.bf16.msra.mxu1 %v1257_v21 }
  0x15   :  { %1027 = vmatprep.subr.bf16.mxu1 %v1169_v1 }
  0x16   :  { %1006 = vmatpush3.bf16.msra.mxu0 %v1257_v21 }
  0x17   :  { %1019 = vmatprep.subr.bf16.mxu0 %v1169_v1 }
  0xe2   :  { %v274_v38 = vpop.f32.mrb[0].mxu1 }
  0xe3   :  { %v1001_v40 = vpop.f32.mrb[1].mxu1 }
  0xe4   :  { %v158_v41 = vpop.f32.mrb[0].mxu0  ;;  %v277_v42 = vpop.f32.mrb[2].mxu1 }
  0xe5   :  { %v159_v43 = vadd.f32 %v927_v37, %v158_v41  ;;  %v993_v44 = vpop.f32.mrb[1].mxu0  ;;  %v1002_v45 = vpop.f32.mrb[3].mxu1 }
  0xe6   :  { %v161_v46 = vpop.f32.mrb[2].mxu0 }
  0xe7   :  { %v167_v47 = vcombine.high %v159_v43, %v159_v43  ;;  %v174_v48 = vrot.slane %v159_v43, %v173_v39  ;;  %931 = vst.sshfl [vmem:[#allocation2] sm:$0x3 pattern:$0x76325410] %v159_v43  ;;  %v162_v49 = vadd.f32 %v927_v37, %v161_v46  ;;  %v994_v50 = vpop.f32.mrb[3].mxu0 }
  0xe9   :  { %v181_v51 = vrot.slane %v167_v47, %v173_v39  ;;  %v182_v52 = vcombine.high %v174_v48, %v174_v48  ;;  %932 = vst.sshfl [vmem:[#allocation2 + $0x4] sm:$0x3 pattern:$0x76325410] %v167_v47  ;;  %v184_v53 = vcombine.high %v162_v49, %v162_v49  ;;  %v191_v54 = vrot.slane %v162_v49, %v173_v39 }
  0xea   :  { %933 = vst.sshfl [vmem:[#allocation2 + $0x8] sm:$0x3 pattern:$0x76325410] %v162_v49 }
  0xeb   :  { %v183_v55 = vcombine.high %v181_v51, %v181_v51  ;;  %210 = vst [vmem:[#allocation2 + $0x2] sm:$0x3] %v182_v52  ;;  %v198_v56 = vrot.slane %v184_v53, %v173_v39  ;;  %v199_v57 = vcombine.high %v191_v54, %v191_v54  ;;  %934 = vst.sshfl [vmem:[#allocation2 + $0xc] sm:$0x3 pattern:$0x76325410] %v184_v53 }
  0xed   :  { %212 = vst [vmem:[#allocation2 + $0x6] sm:$0x3] %v183_v55  ;;  %v200_v58 = vcombine.high %v198_v56, %v198_v56  ;;  %214 = vst [vmem:[#allocation2 + $0xa] sm:$0x3] %v199_v57 }
  0xee   :  { %v219_v59 = vld [vmem:[#allocation2] sm:$0x3] }
  0xef   :  { %216 = vst [vmem:[#allocation2 + $0xe] sm:$0x3] %v200_v58  ;;  %v280_v60 = vadd.f32 %v274_v38, %v219_v59 }
  0xf0   :  { %v384_v38 = vld [vmem:[#allocation2 + $0x4] sm:$0x3] }
  0xf1   :  { %1081 = vtanh.f32 %v280_v60  ;;  %v938_v63 = vmul.f32 -1.442695, %v280_v60 }
  0xf2   :  { %v310_v15 = vld [vmem:[#allocation2 + $0x2] sm:$0x3] }
  0xf3   :  { %1083 = vpow2.f32 %v938_v63 }
  0xf4   :  { %v458_v59 = vld [vmem:[#allocation2 + $0x6] sm:$0x3] }
  0xfb   :  { %v1082_v61 = vpop.eup %1081 }
  0xfc   :  { %294 = vrot.lane.b32.xlu0 %v1082_v61, %s1173_s3 }
  0xfd   :  { %v1084_v0 = vpop.eup %1083 }
  0xfe   :  { %v284_v2 = vadd.f32 1.0, %v1084_v0 }
 0x100   :  { %289 = vrot.lane.b32.xlu0 %v218_v62, %s1174_s20  ;;  %1085 = vrcp.f32 %v284_v2 }
 0x10a   :  { %v1086_v3 = vpop.eup %1085 }
 0x16e   :  { %v295_v4 = vpop.permute.xlu0 %294 }
 0x16f   :  { %v297_v5 = vmul.f32 %v1086_v3, %v295_v4 }
 0x171   :  { %299 = vrot.lane.b32.xlu1 %v297_v5, %s1174_s20 }
 0x172   :  { %v290_v6 = vpop.permute.xlu0 %289 }
 0x173   :  { %v292_v7 = vmul.f32 %v1086_v3, %v290_v6 }
 0x1e3   :  { %v300_v8 = vpop.permute.xlu1 %299 }
 0x1e4   :  { %v302_v9 = vadd.f32 %v300_v8, %v292_v7 }
 0x1e6   :  { %1087 = vtanh.f32 %v302_v9 }
 0x1f0   :  { %v1088_v10 = vpop.eup %1087 }
 0x1f1   :  { %305 = vrot.lane.b32.xlu1 %v1088_v10, %s1173_s3 }
 0x263   :  { %v306_v11 = vpop.permute.xlu1 %305 }
 0x264   :  { %v308_v12 = vmul.f32 %v1086_v3, %v306_v11 }
 0x266   :  { %v311_v13 = vpack.c.bf16 %v308_v12, %v308_v12 }
 0x268   :  { %313 = vrot.lane.b32.xlu0 %v311_v13, %s1174_s20 }
 0x2da   :  { %v314_v14 = vpop.permute.xlu0 %313 }
 0x2db   :  { %1008 = vmatmul.mubr.msk.bf16.vlgmr.msra.gmra.mrb[4].mxu0 %vm120_vm2, %v314_v14 }
 0x2dc   :  { %1020 = vmatpush3.bf16.msra.mxu0 %v1252_v16  ;;  %1023 = vmatprep.mubr.msk.bf16.mxu0 %vm1170_vm0, %v1169_v1 }
 0x2dd   :  { %1021 = vmatprep.subr.bf16.mxu0 %v1169_v1 }
 0x2e0   :  { %1022 = vmatpush3.bf16.msra.mxu0 %v1257_v21 }
 0x2e1   :  { %1035 = vmatprep.subr.bf16.mxu0 %v1169_v1 }
 0x3ae   :  { %v352_v17 = vpop.f32.mrb[4].mxu0 }
 0x3af   :  { %v358_v18 = vadd.f32 %v352_v17, %v310_v15  ;;  %v1009_v19 = vpop.f32.mrb[5].mxu0 }
 0x3b0   :  { %v355_v20 = vpop.f32.mrb[6].mxu0 }
 0x3b1   :  { %1089 = vtanh.f32 %v358_v18  ;;  %v1010_v22 = vpop.f32.mrb[7].mxu0  ;;  %v940_v24 = vmul.f32 -1.442695, %v358_v18  ;;  %v532_v18 = vld [vmem:[#allocation2 + $0x8] sm:$0x3] }
 0x3b3   :  { %1091 = vpow2.f32 %v940_v24 }
 0x3bb   :  { %v1090_v23 = vpop.eup %1089 }
 0x3bc   :  { %368 = vrot.lane.b32.xlu1 %v1090_v23, %s1173_s3 }
 0x3bd   :  { %v1092_v25 = vpop.eup %1091 }
 0x3be   :  { %v362_v26 = vadd.f32 1.0, %v1092_v25 }
 0x3c0   :  { %1093 = vrcp.f32 %v362_v26 }
 0x3ca   :  { %v1094_v27 = vpop.eup %1093 }
 0x3cb   :  { %v366_v30 = vmul.f32 %v1094_v27, %v302_v9 }
 0x42e   :  { %v369_v28 = vpop.permute.xlu1 %368 }
 0x42f   :  { %v371_v29 = vmul.f32 %v1094_v27, %v369_v28 }
 0x431   :  { %373 = vrot.lane.b32.xlu0 %v371_v29, %s1174_s20 }
 0x4a3   :  { %v374_v31 = vpop.permute.xlu0 %373 }
 0x4a4   :  { %v376_v32 = vadd.f32 %v374_v31, %v366_v30 }
 0x4a6   :  { %1095 = vtanh.f32 %v376_v32 }
 0x4b0   :  { %v1096_v33 = vpop.eup %1095 }
 0x4b1   :  { %379 = vrot.lane.b32.xlu1 %v1096_v33, %s1173_s3 }
 0x523   :  { %v380_v34 = vpop.permute.xlu1 %379 }
 0x524   :  { %v382_v35 = vmul.f32 %v1094_v27, %v380_v34 }
 0x526   :  { %v385_v36 = vpack.c.bf16 %v382_v35, %v382_v35 }
 0x528   :  { %387 = vrot.lane.b32.xlu0 %v385_v36, %s1174_s20 }
 0x59a   :  { %v388_v37 = vpop.permute.xlu0 %387 }
 0x59b   :  { %1016 = vmatmul.mubr.msk.bf16.vlgmr.msra.gmra.mrb[4].mxu1 %vm120_vm2, %v388_v37 }
 0x59c   :  { %1028 = vmatpush3.bf16.msra.mxu1 %v1252_v16  ;;  %1031 = vmatprep.mubr.msk.bf16.mxu1 %vm1170_vm0, %v1169_v1 }
 0x59d   :  { %1029 = vmatprep.subr.bf16.mxu1 %v1169_v1 }
 0x5a0   :  { %1030 = vmatpush3.bf16.msra.mxu1 %v1257_v21 }
 0x5a1   :  { %1043 = vmatprep.subr.bf16.mxu1 %v1169_v1 }
 0x66e   :  { %v426_v39 = vpop.f32.mrb[4].mxu1 }
 0x66f   :  { %v432_v40 = vadd.f32 %v426_v39, %v384_v38  ;;  %v1017_v41 = vpop.f32.mrb[5].mxu1 }
 0x670   :  { %v429_v42 = vpop.f32.mrb[6].mxu1 }
 0x671   :  { %1097 = vtanh.f32 %v432_v40  ;;  %v1018_v43 = vpop.f32.mrb[7].mxu1  ;;  %v942_v45 = vmul.f32 -1.442695, %v432_v40  ;;  %v606_v40 = vld [vmem:[#allocation2 + $0xa] sm:$0x3] }
 0x673   :  { %1099 = vpow2.f32 %v942_v45 }
 0x67b   :  { %v1098_v44 = vpop.eup %1097 }
 0x67c   :  { %442 = vrot.lane.b32.xlu1 %v1098_v44, %s1173_s3 }
 0x67d   :  { %v1100_v46 = vpop.eup %1099 }
 0x67e   :  { %v436_v47 = vadd.f32 1.0, %v1100_v46 }
 0x680   :  { %1101 = vrcp.f32 %v436_v47 }
 0x68a   :  { %v1102_v48 = vpop.eup %1101 }
 0x68b   :  { %v440_v51 = vmul.f32 %v1102_v48, %v376_v32 }
 0x6ee   :  { %v443_v49 = vpop.permute.xlu1 %442 }
 0x6ef   :  { %v445_v50 = vmul.f32 %v1102_v48, %v443_v49 }
 0x6f1   :  { %447 = vrot.lane.b32.xlu0 %v445_v50, %s1174_s20 }
 0x763   :  { %v448_v52 = vpop.permute.xlu0 %447 }
 0x764   :  { %v450_v53 = vadd.f32 %v448_v52, %v440_v51 }
 0x766   :  { %1103 = vtanh.f32 %v450_v53 }
 0x770   :  { %v1104_v54 = vpop.eup %1103 }
 0x771   :  { %453 = vrot.lane.b32.xlu1 %v1104_v54, %s1173_s3 }
 0x7e3   :  { %v454_v55 = vpop.permute.xlu1 %453 }
 0x7e4   :  { %v456_v56 = vmul.f32 %v1102_v48, %v454_v55 }
 0x7e6   :  { %v459_v57 = vpack.c.bf16 %v456_v56, %v456_v56 }
 0x7e8   :  { %461 = vrot.lane.b32.xlu0 %v459_v57, %s1174_s20 }
 0x85a   :  { %v462_v58 = vpop.permute.xlu0 %461 }
 0x85b   :  { %1024 = vmatmul.mubr.msk.bf16.vlgmr.msra.gmra.mrb[8].mxu0 %vm120_vm2, %v462_v58 }
 0x85c   :  { %1036 = vmatpush3.bf16.msra.mxu0 %v1252_v16  ;;  %1039 = vmatprep.mubr.msk.bf16.mxu0 %vm1170_vm0, %v1169_v1 }
 0x85d   :  { %1037 = vmatprep.subr.bf16.mxu0 %v1169_v1 }
 0x860   :  { %1038 = vmatpush3.bf16.msra.mxu0 %v1257_v21 }
 0x861   :  { %1051 = vmatprep.subr.bf16.mxu0 %v1169_v1 }
 0x92e   :  { %v500_v60 = vpop.f32.mrb[8].mxu0 }
 0x92f   :  { %v506_v61 = vadd.f32 %v500_v60, %v458_v59  ;;  %v1025_v62 = vpop.f32.mrb[9].mxu0  ;;  %v680_v59 = vld [vmem:[#allocation2 + $0xc] sm:$0x3] }
 0x930   :  { %v503_v63 = vpop.f32.mrb[10].mxu0 }
 0x931   :  { %1105 = vtanh.f32 %v506_v61  ;;  %v1026_v0 = vpop.f32.mrb[11].mxu0  ;;  %v944_v3 = vmul.f32 -1.442695, %v506_v61 }
 0x933   :  { %1107 = vpow2.f32 %v944_v3 }
 0x93b   :  { %v1106_v2 = vpop.eup %1105 }
 0x93c   :  { %516 = vrot.lane.b32.xlu1 %v1106_v2, %s1173_s3 }
 0x93d   :  { %v1108_v4 = vpop.eup %1107 }
 0x93e   :  { %v510_v5 = vadd.f32 1.0, %v1108_v4 }
 0x940   :  { %1109 = vrcp.f32 %v510_v5 }
 0x94a   :  { %v1110_v6 = vpop.eup %1109 }
 0x94b   :  { %v514_v9 = vmul.f32 %v1110_v6, %v450_v53 }
 0x9ae   :  { %v517_v7 = vpop.permute.xlu1 %516 }
 0x9af   :  { %v519_v8 = vmul.f32 %v1110_v6, %v517_v7 }
 0x9b1   :  { %521 = vrot.lane.b32.xlu0 %v519_v8, %s1174_s20 }
 0xa23   :  { %v522_v10 = vpop.permute.xlu0 %521 }
 0xa24   :  { %v524_v11 = vadd.f32 %v522_v10, %v514_v9 }
 0xa26   :  { %1111 = vtanh.f32 %v524_v11 }
 0xa30   :  { %v1112_v12 = vpop.eup %1111 }
 0xa31   :  { %527 = vrot.lane.b32.xlu1 %v1112_v12, %s1173_s3 }
 0xaa3   :  { %v528_v13 = vpop.permute.xlu1 %527 }
 0xaa4   :  { %v530_v14 = vmul.f32 %v1110_v6, %v528_v13 }
 0xaa6   :  { %v533_v15 = vpack.c.bf16 %v530_v14, %v530_v14 }
 0xaa8   :  { %535 = vrot.lane.b32.xlu0 %v533_v15, %s1174_s20 }
 0xb1a   :  { %v536_v17 = vpop.permute.xlu0 %535 }
 0xb1b   :  { %1032 = vmatmul.mubr.msk.bf16.vlgmr.msra.gmra.mrb[8].mxu1 %vm120_vm2, %v536_v17 }
 0xb1c   :  { %1044 = vmatpush3.bf16.msra.mxu1 %v1252_v16  ;;  %1047 = vmatprep.mubr.msk.bf16.mxu1 %vm1170_vm0, %v1169_v1 }
 0xb1d   :  { %1045 = vmatprep.subr.bf16.mxu1 %v1169_v1 }
 0xb20   :  { %1046 = vmatpush3.bf16.msra.mxu1 %v1257_v21 }
 0xb21   :  { %1059 = vmatprep.subr.bf16.mxu1 %v1169_v1 }
 0xbee   :  { %v574_v19 = vpop.f32.mrb[8].mxu1 }
 0xbef   :  { %v580_v20 = vadd.f32 %v574_v19, %v532_v18  ;;  %v1033_v22 = vpop.f32.mrb[9].mxu1  ;;  %v754_v18 = vld [vmem:[#allocation2 + $0xe] sm:$0x3] }
 0xbf0   :  { %v577_v23 = vpop.f32.mrb[10].mxu1 }
 0xbf1   :  { %1113 = vtanh.f32 %v580_v20  ;;  %v1034_v24 = vpop.f32.mrb[11].mxu1  ;;  %v946_v26 = vmul.f32 -1.442695, %v580_v20 }
 0xbf3   :  { %1115 = vpow2.f32 %v946_v26 }
 0xbfb   :  { %v1114_v25 = vpop.eup %1113 }
 0xbfc   :  { %590 = vrot.lane.b32.xlu1 %v1114_v25, %s1173_s3 }
 0xbfd   :  { %v1116_v27 = vpop.eup %1115 }
 0xbfe   :  { %v584_v28 = vadd.f32 1.0, %v1116_v27 }
 0xc00   :  { %1117 = vrcp.f32 %v584_v28 }
 0xc0a   :  { %v1118_v29 = vpop.eup %1117 }
 0xc0b   :  { %v588_v32 = vmul.f32 %v1118_v29, %v524_v11 }
 0xc6e   :  { %v591_v30 = vpop.permute.xlu1 %590 }
 0xc6f   :  { %v593_v31 = vmul.f32 %v1118_v29, %v591_v30 }
 0xc71   :  { %595 = vrot.lane.b32.xlu0 %v593_v31, %s1174_s20 }
 0xce3   :  { %v596_v33 = vpop.permute.xlu0 %595 }
 0xce4   :  { %v598_v34 = vadd.f32 %v596_v33, %v588_v32 }
 0xce6   :  { %1119 = vtanh.f32 %v598_v34 }
 0xcf0   :  { %v1120_v35 = vpop.eup %1119 }
 0xcf1   :  { %601 = vrot.lane.b32.xlu1 %v1120_v35, %s1173_s3  ;;  %v1079_v35 = vld [vmem:[%s1386_s4] sm:$0xff]  }
 0xd63   :  { %v602_v36 = vpop.permute.xlu1 %601 }
 0xd64   :  { %v604_v37 = vmul.f32 %v1118_v29, %v602_v36  ;;  %v1080_v36 = vld [vmem:[%s1386_s4 + $0x8] sm:$0xff]  }
 0xd66   :  { %v607_v38 = vpack.c.bf16 %v604_v37, %v604_v37 }
 0xd68   :  { %609 = vrot.lane.b32.xlu0 %v607_v38, %s1174_s20 }
 0xdda   :  { %v610_v39 = vpop.permute.xlu0 %609 }
 0xddb   :  { %1040 = vmatmul.mubr.msk.bf16.vlgmr.msra.gmra.mrb[12].mxu0 %vm120_vm2, %v610_v39 }
 0xddc   :  { %1052 = vmatpush3.bf16.msra.mxu0 %v1252_v16  ;;  %1055 = vmatprep.mubr.msk.bf16.mxu0 %vm1170_vm0, %v1169_v1 }
 0xddd   :  { %1053 = vmatprep.subr.bf16.mxu0 %v1169_v1 }
 0xde0   :  { %1054 = vmatpush3.bf16.msra.mxu0 %v1257_v21 }
 0xeae   :  { %v648_v41 = vpop.f32.mrb[12].mxu0 }
 0xeaf   :  { %v654_v42 = vadd.f32 %v648_v41, %v606_v40  ;;  %v1041_v43 = vpop.f32.mrb[13].mxu0 }
 0xeb0   :  { %v651_v44 = vpop.f32.mrb[14].mxu0  ;;  %v953_v43 = vld [vmem:[%s1387_s5] ss:$0 sm:$0xff] }
 0xeb1   :  { %1121 = vtanh.f32 %v654_v42  ;;  %v1042_v45 = vpop.f32.mrb[15].mxu0  ;;  %v948_v47 = vmul.f32 -1.442695, %v654_v42 }
 0xeb3   :  { %1123 = vpow2.f32 %v948_v47 }
 0xebb   :  { %v1122_v46 = vpop.eup %1121 }
 0xebc   :  { %664 = vrot.lane.b32.xlu1 %v1122_v46, %s1173_s3 }
 0xebd   :  { %v1124_v16 = vpop.eup %1123 }
 0xebe   :  { %v658_v48 = vadd.f32 1.0, %v1124_v16 }
 0xec0   :  { %1125 = vrcp.f32 %v658_v48 }
 0xeca   :  { %v1126_v49 = vpop.eup %1125 }
 0xecb   :  { %v662_v21 = vmul.f32 %v1126_v49, %v598_v34 }
 0xf2e   :  { %v665_v50 = vpop.permute.xlu1 %664 }
 0xf2f   :  { %v667_v51 = vmul.f32 %v1126_v49, %v665_v50 }
 0xf31   :  { %669 = vrot.lane.b32.xlu0 %v667_v51, %s1174_s20 }
 0xfa3   :  { %v670_v52 = vpop.permute.xlu0 %669 }
 0xfa4   :  { %v672_v53 = vadd.f32 %v670_v52, %v662_v21 }
 0xfa6   :  { %1127 = vtanh.f32 %v672_v53 }
 0xfb0   :  { %v1128_v54 = vpop.eup %1127 }
 0xfb1   :  { %675 = vrot.lane.b32.xlu1 %v1128_v54, %s1173_s3 }
0x1023   :  { %v676_v55 = vpop.permute.xlu1 %675 }
0x1024   :  { %v678_v56 = vmul.f32 %v1126_v49, %v676_v55 }
0x1026   :  { %v681_v57 = vpack.c.bf16 %v678_v56, %v678_v56 }
0x1028   :  { %683 = vrot.lane.b32.xlu0 %v681_v57, %s1174_s20 }
0x109a   :  { %v684_v58 = vpop.permute.xlu0 %683 }
0x109b   :  { %1048 = vmatmul.mubr.msk.bf16.vlgmr.msra.gmra.mrb[12].mxu1 %vm120_vm2, %v684_v58 }
0x109c   :  { %1063 = vmatprep.mubr.msk.bf16.mxu1 %vm1170_vm0, %v1169_v1  ;;  %1060 = vmatpush3.bf16.msra.mxu1 %v1079_v35 }
0x109d   :  { %1061 = vmatprep.subr.bf16.mxu1 %v1169_v1 }
0x10a0   :  { %1062 = vmatpush3.bf16.msra.mxu1 %v1080_v36 }
0x116e   :  { %v722_v60 = vpop.f32.mrb[12].mxu1 }
0x116f   :  { %v728_v61 = vadd.f32 %v722_v60, %v680_v59  ;;  %v1049_v62 = vpop.f32.mrb[13].mxu1 }
0x1170   :  { %v725_v63 = vpop.f32.mrb[14].mxu1 }
0x1171   :  { %1129 = vtanh.f32 %v728_v61  ;;  %v1050_v0 = vpop.f32.mrb[15].mxu1  ;;  %v950_v3 = vmul.f32 -1.442695, %v728_v61 }
0x1173   :  { %1131 = vpow2.f32 %v950_v3 }
0x117b   :  { %v1130_v2 = vpop.eup %1129 }
0x117c   :  { %738 = vrot.lane.b32.xlu1 %v1130_v2, %s1173_s3 }
0x117d   :  { %v1132_v4 = vpop.eup %1131 }
0x117e   :  { %v732_v5 = vadd.f32 1.0, %v1132_v4 }
0x1180   :  { %1133 = vrcp.f32 %v732_v5 }
0x118a   :  { %v1134_v6 = vpop.eup %1133 }
0x118b   :  { %v736_v9 = vmul.f32 %v1134_v6, %v672_v53 }
0x11ee   :  { %v739_v7 = vpop.permute.xlu1 %738 }
0x11ef   :  { %v741_v8 = vmul.f32 %v1134_v6, %v739_v7 }
0x11f1   :  { %743 = vrot.lane.b32.xlu0 %v741_v8, %s1174_s20 }
0x1263   :  { %v744_v10 = vpop.permute.xlu0 %743 }
0x1264   :  { %v746_v11 = vadd.f32 %v744_v10, %v736_v9 }
0x1266   :  { %1135 = vtanh.f32 %v746_v11 }
0x1270   :  { %v1136_v12 = vpop.eup %1135 }
0x1271   :  { %749 = vrot.lane.b32.xlu1 %v1136_v12, %s1173_s3 }
0x12e3   :  { %v750_v13 = vpop.permute.xlu1 %749 }
0x12e4   :  { %v752_v14 = vmul.f32 %v1134_v6, %v750_v13 }
0x12e6   :  { %v755_v15 = vpack.c.bf16 %v752_v14, %v752_v14 }
0x12e8   :  { %757 = vrot.lane.b32.xlu0 %v755_v15, %s1174_s20 }
0x135a   :  { %v758_v17 = vpop.permute.xlu0 %757 }
0x135b   :  { %1056 = vmatmul.mubr.msk.bf16.vlgmr.msra.gmra.mrb[16].mxu0 %vm120_vm2, %v758_v17 }
0x142e   :  { %v796_v19 = vpop.f32.mrb[16].mxu0 }
0x142f   :  { %v802_v20 = vadd.f32 %v796_v19, %v754_v18  ;;  %v1057_v22 = vpop.f32.mrb[17].mxu0 }
0x1430   :  { %v799_v23 = vpop.f32.mrb[18].mxu0 }
0x1431   :  { %1137 = vtanh.f32 %v802_v20  ;;  %v1058_v24 = vpop.f32.mrb[19].mxu0  ;;  %v952_v26 = vmul.f32 -1.442695, %v802_v20 }
0x1433   :  { %1139 = vpow2.f32 %v952_v26 }
0x143b   :  { %v1138_v25 = vpop.eup %1137 }
0x143c   :  { %812 = vrot.lane.b32.xlu1 %v1138_v25, %s1173_s3 }
0x143d   :  { %v1140_v27 = vpop.eup %1139 }
0x143e   :  { %v806_v28 = vadd.f32 1.0, %v1140_v27 }
0x1440   :  { %1141 = vrcp.f32 %v806_v28 }
0x144a   :  { %v1142_v29 = vpop.eup %1141 }
0x144b   :  { %v810_v32 = vmul.f32 %v1142_v29, %v746_v11 }
0x14ae   :  { %v813_v30 = vpop.permute.xlu1 %812 }
0x14af   :  { %v815_v31 = vmul.f32 %v1142_v29, %v813_v30 }
0x14b1   :  { %817 = vrot.lane.b32.xlu0 %v815_v31, %s1174_s20 }
0x1523   :  { %v818_v33 = vpop.permute.xlu0 %817 }
0x1524   :  { %v820_v34 = vadd.f32 %v818_v33, %v810_v32 }
0x1526   :  { %1143 = vtanh.f32 %v820_v34 }
0x1530   :  { %v1144_v37 = vpop.eup %1143 }
0x1531   :  { %823 = vrot.lane.b32.xlu1 %v1144_v37, %s1173_s3 }
0x15a3   :  { %v824_v38 = vpop.permute.xlu1 %823 }
0x15a4   :  { %v826_v39 = vmul.f32 %v1142_v29, %v824_v38 }
0x15a6   :  { %v841_v40 = vpack.c.bf16 %v826_v39, %v826_v39  ;;  %828 = vrot.lane.b32.xlu1 %v826_v39, %s1174_s20 }
0x15a8   :  { %854 = vrot.lane.b32.xlu0 %v841_v40, %s1174_s20 }
0x15ac   :  { %834 = vrot.lane.b32.xlu0 %v820_v34, %s1175_s25 }
0x1618   :  { %v829_v41 = vpop.permute.xlu1 %828 }
0x1619   :  { %832 = vst.msk [vmem:[#allocation3] sm:$0x3] %vm29_vm1, %v829_v41 }
0x161a   :  { %v855_v42 = vpop.permute.xlu0 %854 }
0x161b   :  { %1064 = vmatmul.mubr.msk.bf16.vlgmr.msra.gmra.mrb[16].mxu1 %vm120_vm2, %v855_v42 }
0x161e   :  { %v835_v1 = vpop.permute.xlu0 %834 }
0x161f   :  { %837 = vst.msk [vmem:[#allocation4] sm:$0x3] %vm29_vm1, %v835_v1 }
0x16ee   :  { %v905_v44 = vpop.f32.mrb[16].mxu1 }
0x16ef   :  { %v906_v45 = vadd.f32 %v953_v43, %v905_v44  ;;  %v1065_v46 = vpop.f32.mrb[17].mxu1 }
0x16f0   :  { %v908_v47 = vpop.f32.mrb[18].mxu1 }
0x16f1   :  { %v1066_v16 = vpop.f32.mrb[19].mxu1  ;;  %912 = vst.msk [vmem:[#allocation5] sm:$0x3] %vm911_vm3, %v906_v45 }
0x16f2   :  { %1156 = shalt.err (!%p1153_p4)
}
0x16f3   :  { %s1157_s5 = scalar_lea.hbm %s1388_s6, 32 }
0x16f4   :  { %p1158_p5 = scmp.ne.s32.totalorder %s1388_s6, %s1157_s5  ;;  %p1161_p6 = scmp.lt.u32.totalorder %s1157_s5, %s1388_s6 }
0x16f6   :  { %p1163_p7 = pnand %p1161_p6, %p1158_p5 }
0x16f8   :  { %1166 = shalt.err (!%p1163_p7)
}
0x16f9   :  { %922 = dma.vmem_to_hbm [thread:$0]  %s920_s28, 32, %s1388_s6, [#allocation6]  }
0x16fa   :  { %1167 = dma.done.wait [#allocation6], 32  }
0x16fb   :  { %1168 = vsyncadd [#allocation6], 4294967264 }
0x16fc   :  { %926 = vsyncpa [#allocation6], 1 }

// kernel: rnn_model_forward.2
= control target key start
LH: loop header
LB: loop body
LE: loop exit
PB: predicated region body
PF: predicated region fallthrough
CT: control target
= control target key end

     0   :  { %vm102_vm0 = vcmask 1043456   ;;  %v1319_v0 = vmov 0.0   ;;  %vm1320_vm1 = vmmov 0   ;;  %v1321_v4 = vmov 1966171168   ;;  %s1324_s11 = smov 32   ;;  %s1600_s1 = inlined_call_operand.vmem [shape: bf16[8,128], index: 1, kind: input, shape index: {}]   ;;  %s1601_s0 = inlined_call_operand.vmem [shape: bf16[8,2,8], index: 0, kind: input, shape index: {}]   ;;  %s1602_s2 = inlined_call_operand.vmem [shape: bf16[32,128], index: 2, kind: input, shape index: {}]   ;;  %s1603_s3 = inlined_call_operand.vmem [shape: f32[1,128], index: 3, kind: input, shape index: {}]   ;;  %s1604_s4 = inlined_call_operand.vmem [shape: bf16[8,2,32], index: 4, kind: output, shape index: {}]  }
   0x1   :  { %1162 = vmatprep.subr.bf16.mxu0 %v1319_v0  ;;  %v33_v1 = vld [vmem:[%s1600_s1] sm:$0xf]  ;;  %1164 = vmatprep.mubr.msk.bf16.mxu0 %vm1320_vm1, %v1319_v0  ;;  %v54_v5 = vunpack.c.l.s4 %v1321_v4  ;;  %v56_v6 = vlaneseq  ;;  %v29_v10 = vld [vmem:[%s1601_s0 + $0x4] sm:$0x1]  ;;  %v30_v11 = vld [vmem:[%s1601_s0 + $0x5] sm:$0x1] }
   0x2   :  { %v25_v2 = vld [vmem:[%s1601_s0] sm:$0x1]  ;;  %v26_v3 = vld [vmem:[%s1601_s0 + $0x1] sm:$0x1]  ;;  %v104_v7 = vsel %vm102_vm0, %v33_v1, 0  ;;  %1168 = vmatprep.subr.bf16.mxu1 %v1319_v0  ;;  %1172 = vmatprep.mubr.msk.bf16.mxu1 %vm1320_vm1, %v1319_v0  ;;  %v51_v17 = vcombine.low %v29_v10, %v30_v11  ;;  %vm98_vm2 = vcmask 64512  }
   0x3   :  { %v27_v8 = vld [vmem:[%s1601_s0 + $0x2] sm:$0x1]  ;;  %v28_v9 = vld [vmem:[%s1601_s0 + $0x3] sm:$0x1]  ;;  %1163 = vmatpush3.bf16.msra.mxu0 %v104_v7  ;;  %v31_v12 = vld [vmem:[%s1601_s0 + $0x6] sm:$0x1]  ;;  %v55_v13 = vunpack.c.0.s8 %v54_v5  ;;  %v49_v15 = vcombine.low %v25_v2, %v26_v3 }
   0x4   :  { %v32_v14 = vld [vmem:[%s1601_s0 + $0x7] sm:$0x1]  ;;  %v50_v16 = vcombine.low %v27_v8, %v28_v9  ;;  %v57_v18 = vshrl.u32 %v56_v6, 7  ;;  %1176 = vmatprep.subr.bf16.mxu0 %v1319_v0  ;;  %v1240_v22 = vld [vmem:[%s1602_s2 + $0x8] sm:$0xff]   ;;  %vm22_vm3 = vcmask 254976   ;;  %vm219_vm4 = vcmask 261120  }
   0x5   :  { %v1239_v19 = vld [vmem:[%s1602_s2] sm:$0xff]   ;;  %v52_v20 = vcombine.low %v31_v12, %v32_v14  ;;  %23 = vst.msk [vmem:[#allocation3] sm:$0x3] %vm22_vm3, %v1319_v0  ;;  %24 = vst.msk [vmem:[#allocation4] sm:$0x3] %vm22_vm3, %v1319_v0  ;;  %v1242_v11 = vld [vmem:[%s1602_s2 + $0x8] sm:$0xff]  }
   0x6   :  { %v1388_v21 = vsub.s32 %v55_v13, %v57_v18  ;;  %1169 = vmatpush3.bf16.msra.mxu1 %v1239_v19  ;;  %v1322_v34 = vmov 1983009808   ;;  %v1091_v37 = vld [vmem:[%s1603_s3] ss:$0 sm:$0xff]  ;;  %s1323_s3 = smov 64   ;;  %vm311_vm5 = vcmask 253952  }
   0x7   :  { %1170 = vmatprep.subr.bf16.mxu1 %v1319_v0  ;;  %v151_v35 = vunpack.c.l.s4 %v1322_v34  ;;  %v1241_v10 = vld [vmem:[%s1602_s2] sm:$0xff]   ;;  %s1325_s24 = smov 96  }
   0x8   :  { %v59_v23 = vrot.slane %v49_v15, %v1388_v21  ;;  %v66_v24 = vrot.slane %v50_v16, %v1388_v21  ;;  %v73_v25 = vrot.slane %v51_v17, %v1388_v21  ;;  %v80_v26 = vrot.slane %v52_v20, %v1388_v21  ;;  %v1243_v34 = vld [vmem:[%s1602_s2] sm:$0xff]  }
   0x9   :  { %v152_v36 = vunpack.c.0.s8 %v151_v35  ;;  %v1244_v35 = vld [vmem:[%s1602_s2 + $0x8] sm:$0xff]  }
   0xa   :  { %v81_v27 = vcombine.low %v59_v23, %v66_v24  ;;  %v82_v28 = vcombine.low %v73_v25, %v80_v26  ;;  %1171 = vmatpush3.bf16.msra.mxu1 %v1240_v22 }
   0xb   :  { %1184 = vmatprep.subr.bf16.mxu1 %v1319_v0  ;;  %v155_v38 = vsub.s32 %v152_v36, %v57_v18 }
   0xc   :  { %v89_v29 = vrot.slane %v81_v27, %v1388_v21  ;;  %v96_v30 = vrot.slane %v82_v28, %v1388_v21  ;;  %v199_v32 = vld [vmem:[#allocation3] sm:$0x3]  ;;  %v200_v62 = vld [vmem:[#allocation4] sm:$0x3] }
   0xd   :  { %v202_v33 = vpack.c.bf16 %v199_v32, %v199_v32 }
   0xe   :  { %v97_v31 = vcombine.low %v89_v29, %v96_v30 }
   0xf   :  { %1173 = vmatmul.mubr.msk.bf16.vlgmr.msra.gmra.mrb[0].mxu1 %vm219_vm4, %v202_v33 }
  0x10   :  { %1165 = vmatmul.mubr.msk.bf16.vlgmr.msra.gmra.mrb[0].mxu0 %vm98_vm2, %v97_v31  ;;  %1188 = vmatprep.mubr.msk.bf16.mxu1 %vm1320_vm1, %v1319_v0 }
  0x11   :  { %1180 = vmatprep.mubr.msk.bf16.mxu0 %vm1320_vm1, %v1319_v0  ;;  %1177 = vmatpush3.bf16.msra.mxu0 %v1241_v10 }
  0x12   :  { %1178 = vmatprep.subr.bf16.mxu0 %v1319_v0  ;;  %1185 = vmatpush3.bf16.msra.mxu1 %v1243_v34 }
  0x13   :  { %1186 = vmatprep.subr.bf16.mxu1 %v1319_v0 }
  0x15   :  { %1179 = vmatpush3.bf16.msra.mxu0 %v1242_v11 }
  0x16   :  { %1192 = vmatprep.subr.bf16.mxu0 %v1319_v0  ;;  %1187 = vmatpush3.bf16.msra.mxu1 %v1244_v35 }
  0x17   :  { %1200 = vmatprep.subr.bf16.mxu1 %v1319_v0 }
  0xe2   :  { %v257_v42 = vpop.f32.mrb[0].mxu1 }
  0xe3   :  { %v140_v39 = vpop.f32.mrb[0].mxu0  ;;  %v1174_v44 = vpop.f32.mrb[1].mxu1 }
  0xe4   :  { %v141_v40 = vadd.f32 %v1091_v37, %v140_v39  ;;  %v1166_v41 = vpop.f32.mrb[1].mxu0  ;;  %v260_v49 = vpop.f32.mrb[2].mxu1 }
  0xe5   :  { %v143_v43 = vpop.f32.mrb[2].mxu0  ;;  %v1175_v50 = vpop.f32.mrb[3].mxu1 }
  0xe6   :  { %v149_v45 = vcombine.high %v141_v40, %v141_v40  ;;  %v156_v46 = vrot.slane %v141_v40, %v155_v38  ;;  %1093 = vst.sshfl [vmem:[#allocation2] sm:$0x3 pattern:$0x76325410] %v141_v40  ;;  %v144_v47 = vadd.f32 %v1091_v37, %v143_v43  ;;  %v1167_v48 = vpop.f32.mrb[3].mxu0 }
  0xe8   :  { %v163_v51 = vrot.slane %v149_v45, %v155_v38  ;;  %v164_v52 = vcombine.high %v156_v46, %v156_v46  ;;  %1094 = vst.sshfl [vmem:[#allocation2 + $0x4] sm:$0x3 pattern:$0x76325410] %v149_v45  ;;  %v166_v53 = vcombine.high %v144_v47, %v144_v47  ;;  %v173_v54 = vrot.slane %v144_v47, %v155_v38 }
  0xe9   :  { %1095 = vst.sshfl [vmem:[#allocation2 + $0x8] sm:$0x3 pattern:$0x76325410] %v144_v47 }
  0xea   :  { %v165_v55 = vcombine.high %v163_v51, %v163_v51  ;;  %192 = vst [vmem:[#allocation2 + $0x2] sm:$0x3] %v164_v52  ;;  %v180_v56 = vrot.slane %v166_v53, %v155_v38  ;;  %v181_v57 = vcombine.high %v173_v54, %v173_v54  ;;  %1096 = vst.sshfl [vmem:[#allocation2 + $0xc] sm:$0x3 pattern:$0x76325410] %v166_v53 }
  0xec   :  { %194 = vst [vmem:[#allocation2 + $0x6] sm:$0x3] %v165_v55  ;;  %v182_v58 = vcombine.high %v180_v56, %v180_v56  ;;  %196 = vst [vmem:[#allocation2 + $0xa] sm:$0x3] %v181_v57  ;;  %v1245_v57 = vld [vmem:[%s1602_s2] sm:$0xff]  }
  0xed   :  { %v201_v59 = vld [vmem:[#allocation2] sm:$0x3] }
  0xee   :  { %198 = vst [vmem:[#allocation2 + $0xe] sm:$0x3] %v182_v58  ;;  %v263_v60 = vadd.f32 %v257_v42, %v201_v59  ;;  %v1246_v58 = vld [vmem:[%s1602_s2 + $0x8] sm:$0xff]  }
  0xef   :  { %v423_v41 = vld [vmem:[#allocation2 + $0x4] sm:$0x3] }
  0xf0   :  { %1255 = vtanh.f32 %v263_v60  ;;  %v1100_v63 = vmul.f32 -1.442695, %v263_v60 }
  0xf1   :  { %v314_v17 = vld [vmem:[#allocation2 + $0x2] sm:$0x3] }
  0xf2   :  { %1257 = vpow2.f32 %v1100_v63 }
  0xfa   :  { %v1256_v61 = vpop.eup %1255 }
  0xfb   :  { %277 = vrot.lane.b32.xlu0 %v1256_v61, %s1323_s3 }
  0xfc   :  { %v1258_v1 = vpop.eup %1257 }
  0xfd   :  { %v267_v2 = vadd.f32 1.0, %v1258_v1  ;;  %v532_v1 = vld [vmem:[#allocation2 + $0x6] sm:$0x3] }
  0xff   :  { %272 = vrot.lane.b32.xlu0 %v200_v62, %s1324_s11  ;;  %1259 = vrcp.f32 %v267_v2 }
 0x109   :  { %v1260_v3 = vpop.eup %1259 }
 0x16d   :  { %v278_v4 = vpop.permute.xlu0 %277 }
 0x16e   :  { %v280_v5 = vmul.f32 %v1260_v3, %v278_v4 }
 0x170   :  { %282 = vrot.lane.b32.xlu1 %v280_v5, %s1324_s11 }
 0x171   :  { %v273_v6 = vpop.permute.xlu0 %272 }
 0x172   :  { %v275_v7 = vmul.f32 %v1260_v3, %v273_v6 }
 0x1e2   :  { %v283_v8 = vpop.permute.xlu1 %282 }
 0x1e3   :  { %v285_v9 = vadd.f32 %v283_v8, %v275_v7 }
 0x1e5   :  { %1261 = vtanh.f32 %v285_v9 }
 0x1ef   :  { %v1262_v12 = vpop.eup %1261 }
 0x1f0   :  { %288 = vrot.lane.b32.xlu1 %v1262_v12, %s1323_s3 }
 0x262   :  { %v289_v13 = vpop.permute.xlu1 %288 }
 0x263   :  { %v291_v14 = vmul.f32 %v1260_v3, %v289_v13 }
 0x265   :  { %v1426_v15 = vpack.c.bf16 %v291_v14, %v291_v14 }
 0x267   :  { %319 = vrot.lane.b32.xlu0 %v1426_v15, %s1324_s11 }
 0x2d9   :  { %v320_v16 = vpop.permute.xlu0 %319 }
 0x2da   :  { %1181 = vmatmul.mubr.msk.bf16.vlgmr.msra.gmra.mrb[4].mxu0 %vm219_vm4, %v320_v16 }
 0x2db   :  { %1196 = vmatprep.mubr.msk.bf16.mxu0 %vm1320_vm1, %v1319_v0  ;;  %1193 = vmatpush3.bf16.msra.mxu0 %v1245_v57 }
 0x2dc   :  { %1194 = vmatprep.subr.bf16.mxu0 %v1319_v0 }
 0x2df   :  { %1195 = vmatpush3.bf16.msra.mxu0 %v1246_v58 }
 0x2e0   :  { %1208 = vmatprep.subr.bf16.mxu0 %v1319_v0 }
 0x3ad   :  { %v370_v18 = vpop.f32.mrb[4].mxu0 }
 0x3ae   :  { %v376_v19 = vadd.f32 %v370_v18, %v314_v17  ;;  %v1182_v20 = vpop.f32.mrb[5].mxu0  ;;  %v1247_v18 = vld [vmem:[%s1602_s2] sm:$0xff]  }
 0x3af   :  { %v373_v22 = vpop.f32.mrb[6].mxu0 }
 0x3b0   :  { %1263 = vtanh.f32 %v376_v19  ;;  %v1183_v23 = vpop.f32.mrb[7].mxu0  ;;  %v1104_v25 = vmul.f32 -1.442695, %v376_v19  ;;  %v1248_v19 = vld [vmem:[%s1602_s2 + $0x8] sm:$0xff]  }
 0x3b2   :  { %1265 = vpow2.f32 %v1104_v25 }
 0x3ba   :  { %v1264_v24 = vpop.eup %1263 }
 0x3bb   :  { %386 = vrot.lane.b32.xlu1 %v1264_v24, %s1323_s3 }
 0x3bc   :  { %v1266_v26 = vpop.eup %1265 }
 0x3bd   :  { %v380_v27 = vadd.f32 1.0, %v1266_v26  ;;  %v641_v26 = vld [vmem:[#allocation2 + $0x8] sm:$0x3] }
 0x3bf   :  { %1267 = vrcp.f32 %v380_v27 }
 0x3c9   :  { %v1268_v28 = vpop.eup %1267 }
 0x3ca   :  { %v384_v31 = vmul.f32 %v1268_v28, %v285_v9 }
 0x42d   :  { %v387_v29 = vpop.permute.xlu1 %386 }
 0x42e   :  { %v389_v30 = vmul.f32 %v1268_v28, %v387_v29 }
 0x430   :  { %391 = vrot.lane.b32.xlu0 %v389_v30, %s1324_s11 }
 0x4a2   :  { %v392_v32 = vpop.permute.xlu0 %391 }
 0x4a3   :  { %v394_v33 = vadd.f32 %v392_v32, %v384_v31 }
 0x4a5   :  { %1269 = vtanh.f32 %v394_v33 }
 0x4af   :  { %v1270_v36 = vpop.eup %1269 }
 0x4b0   :  { %397 = vrot.lane.b32.xlu1 %v1270_v36, %s1323_s3 }
 0x522   :  { %v398_v37 = vpop.permute.xlu1 %397 }
 0x523   :  { %v400_v38 = vmul.f32 %v1268_v28, %v398_v37 }
 0x525   :  { %v1444_v39 = vpack.c.bf16 %v400_v38, %v400_v38 }
 0x527   :  { %428 = vrot.lane.b32.xlu0 %v1444_v39, %s1324_s11 }
 0x599   :  { %v429_v40 = vpop.permute.xlu0 %428 }
 0x59a   :  { %1189 = vmatmul.mubr.msk.bf16.vlgmr.msra.gmra.mrb[4].mxu1 %vm219_vm4, %v429_v40 }
 0x59b   :  { %1204 = vmatprep.mubr.msk.bf16.mxu1 %vm1320_vm1, %v1319_v0  ;;  %1201 = vmatpush3.bf16.msra.mxu1 %v1247_v18 }
 0x59c   :  { %1202 = vmatprep.subr.bf16.mxu1 %v1319_v0 }
 0x59f   :  { %1203 = vmatpush3.bf16.msra.mxu1 %v1248_v19 }
 0x5a0   :  { %1216 = vmatprep.subr.bf16.mxu1 %v1319_v0 }
 0x66d   :  { %v479_v42 = vpop.f32.mrb[4].mxu1 }
 0x66e   :  { %v485_v43 = vadd.f32 %v479_v42, %v423_v41  ;;  %v1190_v44 = vpop.f32.mrb[5].mxu1 }
 0x66f   :  { %v482_v45 = vpop.f32.mrb[6].mxu1  ;;  %v1250_v44 = vld [vmem:[%s1602_s2 + $0x8] sm:$0xff]  }
 0x670   :  { %1271 = vtanh.f32 %v485_v43  ;;  %v1191_v46 = vpop.f32.mrb[7].mxu1  ;;  %v1109_v48 = vmul.f32 -1.442695, %v485_v43  ;;  %v1249_v43 = vld [vmem:[%s1602_s2] sm:$0xff]  }
 0x672   :  { %1273 = vpow2.f32 %v1109_v48 }
 0x67a   :  { %v1272_v47 = vpop.eup %1271 }
 0x67b   :  { %495 = vrot.lane.b32.xlu1 %v1272_v47, %s1323_s3 }
 0x67c   :  { %v1274_v49 = vpop.eup %1273 }
 0x67d   :  { %v489_v50 = vadd.f32 1.0, %v1274_v49 }
 0x67f   :  { %1275 = vrcp.f32 %v489_v50  ;;  %v750_v50 = vld [vmem:[#allocation2 + $0xa] sm:$0x3] }
 0x689   :  { %v1276_v51 = vpop.eup %1275 }
 0x68a   :  { %v493_v54 = vmul.f32 %v1276_v51, %v394_v33 }
 0x6ed   :  { %v496_v52 = vpop.permute.xlu1 %495 }
 0x6ee   :  { %v498_v53 = vmul.f32 %v1276_v51, %v496_v52 }
 0x6f0   :  { %500 = vrot.lane.b32.xlu0 %v498_v53, %s1324_s11 }
 0x762   :  { %v501_v55 = vpop.permute.xlu0 %500 }
 0x763   :  { %v503_v56 = vadd.f32 %v501_v55, %v493_v54 }
 0x765   :  { %1277 = vtanh.f32 %v503_v56 }
 0x76f   :  { %v1278_v59 = vpop.eup %1277 }
 0x770   :  { %506 = vrot.lane.b32.xlu1 %v1278_v59, %s1323_s3 }
 0x7e2   :  { %v507_v60 = vpop.permute.xlu1 %506 }
 0x7e3   :  { %v509_v61 = vmul.f32 %v1276_v51, %v507_v60 }
 0x7e5   :  { %v1462_v62 = vpack.c.bf16 %v509_v61, %v509_v61 }
 0x7e7   :  { %537 = vrot.lane.b32.xlu0 %v1462_v62, %s1324_s11 }
 0x859   :  { %v538_v63 = vpop.permute.xlu0 %537 }
 0x85a   :  { %1197 = vmatmul.mubr.msk.bf16.vlgmr.msra.gmra.mrb[8].mxu0 %vm219_vm4, %v538_v63 }
 0x85b   :  { %1212 = vmatprep.mubr.msk.bf16.mxu0 %vm1320_vm1, %v1319_v0  ;;  %1209 = vmatpush3.bf16.msra.mxu0 %v1249_v43 }
 0x85c   :  { %1210 = vmatprep.subr.bf16.mxu0 %v1319_v0 }
 0x85f   :  { %1211 = vmatpush3.bf16.msra.mxu0 %v1250_v44 }
 0x860   :  { %1224 = vmatprep.subr.bf16.mxu0 %v1319_v0 }
 0x92d   :  { %v588_v2 = vpop.f32.mrb[8].mxu0 }
 0x92e   :  { %v594_v3 = vadd.f32 %v588_v2, %v532_v1  ;;  %v1198_v4 = vpop.f32.mrb[9].mxu0 }
 0x92f   :  { %v591_v5 = vpop.f32.mrb[10].mxu0  ;;  %v1251_v4 = vld [vmem:[%s1602_s2] sm:$0xff]  }
 0x930   :  { %1279 = vtanh.f32 %v594_v3  ;;  %v1199_v6 = vpop.f32.mrb[11].mxu0  ;;  %v1114_v8 = vmul.f32 -1.442695, %v594_v3  ;;  %v1252_v5 = vld [vmem:[%s1602_s2 + $0x8] sm:$0xff]  }
 0x932   :  { %1281 = vpow2.f32 %v1114_v8 }
 0x93a   :  { %v1280_v7 = vpop.eup %1279 }
 0x93b   :  { %604 = vrot.lane.b32.xlu1 %v1280_v7, %s1323_s3 }
 0x93c   :  { %v1282_v9 = vpop.eup %1281 }
 0x93d   :  { %v598_v10 = vadd.f32 1.0, %v1282_v9 }
 0x93f   :  { %1283 = vrcp.f32 %v598_v10 }
 0x949   :  { %v1284_v11 = vpop.eup %1283 }
 0x94a   :  { %v602_v14 = vmul.f32 %v1284_v11, %v503_v56 }
 0x9ad   :  { %v605_v12 = vpop.permute.xlu1 %604 }
 0x9ae   :  { %v607_v13 = vmul.f32 %v1284_v11, %v605_v12 }
 0x9b0   :  { %609 = vrot.lane.b32.xlu0 %v607_v13, %s1324_s11 }
 0xa22   :  { %v610_v16 = vpop.permute.xlu0 %609 }
 0xa23   :  { %v612_v17 = vadd.f32 %v610_v16, %v602_v14 }
 0xa25   :  { %1285 = vtanh.f32 %v612_v17 }
 0xa2f   :  { %v1286_v20 = vpop.eup %1285 }
 0xa30   :  { %615 = vrot.lane.b32.xlu1 %v1286_v20, %s1323_s3 }
 0xaa2   :  { %v616_v22 = vpop.permute.xlu1 %615 }
 0xaa3   :  { %v618_v23 = vmul.f32 %v1284_v11, %v616_v22  ;;  %v859_v11 = vld [vmem:[#allocation2 + $0xc] sm:$0x3] }
 0xaa5   :  { %v1480_v24 = vpack.c.bf16 %v618_v23, %v618_v23 }
 0xaa7   :  { %646 = vrot.lane.b32.xlu0 %v1480_v24, %s1324_s11 }
 0xb19   :  { %v647_v25 = vpop.permute.xlu0 %646 }
 0xb1a   :  { %1205 = vmatmul.mubr.msk.bf16.vlgmr.msra.gmra.mrb[8].mxu1 %vm219_vm4, %v647_v25 }
 0xb1b   :  { %1220 = vmatprep.mubr.msk.bf16.mxu1 %vm1320_vm1, %v1319_v0  ;;  %1217 = vmatpush3.bf16.msra.mxu1 %v1251_v4 }
 0xb1c   :  { %1218 = vmatprep.subr.bf16.mxu1 %v1319_v0 }
 0xb1f   :  { %1219 = vmatpush3.bf16.msra.mxu1 %v1252_v5 }
 0xbed   :  { %v697_v27 = vpop.f32.mrb[8].mxu1 }
 0xbee   :  { %v703_v28 = vadd.f32 %v697_v27, %v641_v26  ;;  %v1206_v29 = vpop.f32.mrb[9].mxu1 }
 0xbef   :  { %v700_v30 = vpop.f32.mrb[10].mxu1 }
 0xbf0   :  { %1287 = vtanh.f32 %v703_v28  ;;  %v1207_v31 = vpop.f32.mrb[11].mxu1  ;;  %v1119_v33 = vmul.f32 -1.442695, %v703_v28  ;;  %v1253_v30 = vld [vmem:[%s1602_s2] sm:$0xff]  }
 0xbf1   :  { %v1254_v31 = vld [vmem:[%s1602_s2 + $0x8] sm:$0xff]  }
 0xbf2   :  { %1289 = vpow2.f32 %v1119_v33 }
 0xbfa   :  { %v1288_v32 = vpop.eup %1287 }
 0xbfb   :  { %713 = vrot.lane.b32.xlu1 %v1288_v32, %s1323_s3 }
 0xbfc   :  { %v1290_v34 = vpop.eup %1289 }
 0xbfd   :  { %v707_v35 = vadd.f32 1.0, %v1290_v34 }
 0xbff   :  { %1291 = vrcp.f32 %v707_v35 }
 0xc09   :  { %v1292_v36 = vpop.eup %1291 }
 0xc0a   :  { %v711_v40 = vmul.f32 %v1292_v36, %v612_v17 }
 0xc6d   :  { %v714_v37 = vpop.permute.xlu1 %713 }
 0xc6e   :  { %v716_v38 = vmul.f32 %v1292_v36, %v714_v37  ;;  %v968_v37 = vld [vmem:[#allocation2 + $0xe] sm:$0x3] }
 0xc70   :  { %718 = vrot.lane.b32.xlu0 %v716_v38, %s1324_s11 }
 0xce2   :  { %v719_v41 = vpop.permute.xlu0 %718 }
 0xce3   :  { %v721_v42 = vadd.f32 %v719_v41, %v711_v40 }
 0xce5   :  { %1293 = vtanh.f32 %v721_v42 }
 0xcef   :  { %v1294_v45 = vpop.eup %1293 }
 0xcf0   :  { %724 = vrot.lane.b32.xlu1 %v1294_v45, %s1323_s3 }
 0xd62   :  { %v725_v46 = vpop.permute.xlu1 %724 }
 0xd63   :  { %v727_v47 = vmul.f32 %v1292_v36, %v725_v46 }
 0xd65   :  { %v1498_v48 = vpack.c.bf16 %v727_v47, %v727_v47 }
 0xd67   :  { %755 = vrot.lane.b32.xlu0 %v1498_v48, %s1324_s11 }
 0xdd9   :  { %v756_v49 = vpop.permute.xlu0 %755 }
 0xdda   :  { %1213 = vmatmul.mubr.msk.bf16.vlgmr.msra.gmra.mrb[12].mxu0 %vm219_vm4, %v756_v49 }
 0xddb   :  { %1228 = vmatprep.mubr.msk.bf16.mxu0 %vm1320_vm1, %v1319_v0  ;;  %1225 = vmatpush3.bf16.msra.mxu0 %v1253_v30 }
 0xddc   :  { %1226 = vmatprep.subr.bf16.mxu0 %v1319_v0 }
 0xddf   :  { %1227 = vmatpush3.bf16.msra.mxu0 %v1254_v31 }
 0xead   :  { %v806_v51 = vpop.f32.mrb[12].mxu0 }
 0xeae   :  { %v812_v52 = vadd.f32 %v806_v51, %v750_v50  ;;  %v1214_v53 = vpop.f32.mrb[13].mxu0  ;;  %v300_v50 = vrot.slane %v1426_v15, %v1388_v21 }
 0xeaf   :  { %v809_v54 = vpop.f32.mrb[14].mxu0 }
 0xeb0   :  { %1295 = vtanh.f32 %v812_v52  ;;  %v1215_v55 = vpop.f32.mrb[15].mxu0  ;;  %v1124_v57 = vmul.f32 -1.442695, %v812_v52  ;;  %v518_v52 = vrot.slane %v1462_v62, %v1388_v21  ;;  %v307_v53 = vrot.slane %v300_v50, %v1388_v21 }
 0xeb1   :  { %v736_v54 = vrot.slane %v1498_v48, %v1388_v21 }
 0xeb2   :  { %1297 = vpow2.f32 %v1124_v57  ;;  %v525_v55 = vrot.slane %v518_v52, %v1388_v21 }
 0xeb3   :  { %v743_v15 = vrot.slane %v736_v54, %v1388_v21 }
 0xeba   :  { %v1296_v56 = vpop.eup %1295 }
 0xebb   :  { %822 = vrot.lane.b32.xlu1 %v1296_v56, %s1323_s3 }
 0xebc   :  { %v1298_v58 = vpop.eup %1297 }
 0xebd   :  { %v816_v59 = vadd.f32 1.0, %v1298_v58 }
 0xebf   :  { %1299 = vrcp.f32 %v816_v59 }
 0xec9   :  { %v1300_v60 = vpop.eup %1299 }
 0xeca   :  { %v820_v1 = vmul.f32 %v1300_v60, %v721_v42 }
 0xf2d   :  { %v823_v61 = vpop.permute.xlu1 %822 }
 0xf2e   :  { %v825_v63 = vmul.f32 %v1300_v60, %v823_v61  ;;  %v409_v61 = vrot.slane %v1444_v39, %v1388_v21 }
 0xf30   :  { %827 = vrot.lane.b32.xlu0 %v825_v63, %s1324_s11  ;;  %v416_v4 = vrot.slane %v409_v61, %v1388_v21 }
 0xfa2   :  { %v828_v2 = vpop.permute.xlu0 %827 }
 0xfa3   :  { %v830_v3 = vadd.f32 %v828_v2, %v820_v1  ;;  %v627_v2 = vrot.slane %v1480_v24, %v1388_v21 }
 0xfa5   :  { %1301 = vtanh.f32 %v830_v3  ;;  %v634_v5 = vrot.slane %v627_v2, %v1388_v21 }
 0xfaf   :  { %v1302_v6 = vpop.eup %1301 }
 0xfb0   :  { %833 = vrot.lane.b32.xlu1 %v1302_v6, %s1323_s3 }
0x1022   :  { %v834_v7 = vpop.permute.xlu1 %833 }
0x1023   :  { %v836_v8 = vmul.f32 %v1300_v60, %v834_v7 }
0x1025   :  { %v1515_v9 = vpack.c.bf16 %v836_v8, %v836_v8 }
0x1027   :  { %864 = vrot.lane.b32.xlu0 %v1515_v9, %s1324_s11  ;;  %v845_v39 = vrot.slane %v1515_v9, %v1388_v21 }
0x1029   :  { %v852_v6 = vrot.slane %v845_v39, %v1388_v21 }
0x1099   :  { %v865_v10 = vpop.permute.xlu0 %864 }
0x109a   :  { %1221 = vmatmul.mubr.msk.bf16.vlgmr.msra.gmra.mrb[12].mxu1 %vm219_vm4, %v865_v10 }
0x116d   :  { %v915_v12 = vpop.f32.mrb[12].mxu1 }
0x116e   :  { %v921_v13 = vadd.f32 %v915_v12, %v859_v11  ;;  %v1222_v14 = vpop.f32.mrb[13].mxu1 }
0x116f   :  { %v918_v16 = vpop.f32.mrb[14].mxu1 }
0x1170   :  { %1303 = vtanh.f32 %v921_v13  ;;  %v1223_v17 = vpop.f32.mrb[15].mxu1  ;;  %v1129_v19 = vmul.f32 -1.442695, %v921_v13 }
0x1172   :  { %1305 = vpow2.f32 %v1129_v19 }
0x117a   :  { %v1304_v18 = vpop.eup %1303 }
0x117b   :  { %931 = vrot.lane.b32.xlu1 %v1304_v18, %s1323_s3 }
0x117c   :  { %v1306_v20 = vpop.eup %1305 }
0x117d   :  { %v925_v22 = vadd.f32 1.0, %v1306_v20 }
0x117f   :  { %1307 = vrcp.f32 %v925_v22 }
0x1189   :  { %v1308_v23 = vpop.eup %1307 }
0x118a   :  { %v929_v27 = vmul.f32 %v1308_v23, %v830_v3 }
0x11ed   :  { %v932_v25 = vpop.permute.xlu1 %931 }
0x11ee   :  { %v934_v26 = vmul.f32 %v1308_v23, %v932_v25 }
0x11f0   :  { %936 = vrot.lane.b32.xlu0 %v934_v26, %s1324_s11 }
0x1262   :  { %v937_v28 = vpop.permute.xlu0 %936 }
0x1263   :  { %v939_v29 = vadd.f32 %v937_v28, %v929_v27 }
0x1265   :  { %1309 = vtanh.f32 %v939_v29 }
0x126f   :  { %v1310_v32 = vpop.eup %1309 }
0x1270   :  { %942 = vrot.lane.b32.xlu1 %v1310_v32, %s1323_s3 }
0x12e2   :  { %v943_v33 = vpop.permute.xlu1 %942 }
0x12e3   :  { %v945_v34 = vmul.f32 %v1308_v23, %v943_v33 }
0x12e5   :  { %v946_v35 = vpack.c.bf16 %v945_v34, %v945_v34 }
0x12e7   :  { %973 = vrot.lane.b32.xlu0 %v946_v35, %s1324_s11  ;;  %v954_v56 = vrot.slane %v946_v35, %v1388_v21 }
0x12e9   :  { %v961_v57 = vrot.slane %v954_v56, %v1388_v21 }
0x1359   :  { %v974_v36 = vpop.permute.xlu0 %973 }
0x135a   :  { %1229 = vmatmul.mubr.msk.bf16.vlgmr.msra.gmra.mrb[16].mxu0 %vm219_vm4, %v974_v36 }
0x142d   :  { %v1024_v38 = vpop.f32.mrb[16].mxu0 }
0x142e   :  { %v1030_v40 = vadd.f32 %v1024_v38, %v968_v37  ;;  %v1230_v41 = vpop.f32.mrb[17].mxu0 }
0x142f   :  { %v1027_v42 = vpop.f32.mrb[18].mxu0 }
0x1430   :  { %1311 = vtanh.f32 %v1030_v40  ;;  %v1231_v43 = vpop.f32.mrb[19].mxu0  ;;  %v1134_v44 = vmul.f32 -1.442695, %v1030_v40 }
0x1432   :  { %1313 = vpow2.f32 %v1134_v44 }
0x143a   :  { %v1312_v0 = vpop.eup %1311 }
0x143b   :  { %1040 = vrot.lane.b32.xlu1 %v1312_v0, %s1323_s3 }
0x143c   :  { %v1314_v45 = vpop.eup %1313 }
0x143d   :  { %v1034_v46 = vadd.f32 1.0, %v1314_v45 }
0x143f   :  { %1315 = vrcp.f32 %v1034_v46 }
0x1449   :  { %v1316_v47 = vpop.eup %1315 }
0x144a   :  { %v1038_v62 = vmul.f32 %v1316_v47, %v939_v29 }
0x14ad   :  { %v1041_v49 = vpop.permute.xlu1 %1040 }
0x14ae   :  { %v1043_v51 = vmul.f32 %v1316_v47, %v1041_v49 }
0x14b0   :  { %1045 = vrot.lane.b32.xlu0 %v1043_v51, %s1324_s11 }
0x14b4   :  { %308 = vrot.lane.b32.xlu0 %v307_v53, %s1324_s11 }
0x14b8   :  { %526 = vrot.lane.b32.xlu0 %v525_v55, %s1324_s11 }
0x14bc   :  { %744 = vrot.lane.b32.xlu0 %v743_v15, %s1324_s11 }
0x14c0   :  { %962 = vrot.lane.b32.xlu0 %v961_v57, %s1324_s11 }
0x1522   :  { %v1046_v58 = vpop.permute.xlu0 %1045 }
0x1523   :  { %v1048_v59 = vadd.f32 %v1046_v58, %v1038_v62 }
0x1525   :  { %1317 = vtanh.f32 %v1048_v59 }
0x1526   :  { %v309_v48 = vpop.permute.xlu0 %308 }
0x1527   :  { %312 = vst.msk [vmem:[%s1604_s4] sm:$0x1] %vm311_vm5, %v309_v48 }
0x152a   :  { %v527_v60 = vpop.permute.xlu0 %526 }
0x152b   :  { %1110 = vst.msk [vmem:[%s1604_s4 + $0x2] sm:$0x1] %vm311_vm5, %v527_v60 }
0x152e   :  { %v745_v63 = vpop.permute.xlu0 %744 }
0x152f   :  { %v1318_v1 = vpop.eup %1317  ;;  %1120 = vst.msk [vmem:[%s1604_s4 + $0x4] sm:$0x1] %vm311_vm5, %v745_v63 }
0x1530   :  { %1051 = vrot.lane.b32.xlu1 %v1318_v1, %s1323_s3 }
0x1532   :  { %v963_v3 = vpop.permute.xlu0 %962 }
0x1533   :  { %1130 = vst.msk [vmem:[%s1604_s4 + $0x6] sm:$0x1] %vm311_vm5, %v963_v3 }
0x1534   :  { %417 = vrot.lane.b32.xlu1 %v416_v4, %s1324_s11 }
0x1538   :  { %635 = vrot.lane.b32.xlu1 %v634_v5, %s1324_s11 }
0x153c   :  { %853 = vrot.lane.b32.xlu1 %v852_v6, %s1324_s11 }
0x15a2   :  { %v1052_v24 = vpop.permute.xlu1 %1051 }
0x15a3   :  { %v1054_v7 = vmul.f32 %v1316_v47, %v1052_v24 }
0x15a5   :  { %v1055_v8 = vpack.c.bf16 %v1054_v7, %v1054_v7  ;;  %1077 = vrot.lane.b32.xlu0 %v1054_v7, %s1324_s11 }
0x15a6   :  { %v418_v10 = vpop.permute.xlu1 %417 }
0x15a7   :  { %v1063_v11 = vrot.slane %v1055_v8, %v1388_v21  ;;  %1105 = vst.msk [vmem:[%s1604_s4 + $0x1] sm:$0x1] %vm311_vm5, %v418_v10 }
0x15a9   :  { %v1070_v9 = vrot.slane %v1063_v11, %v1388_v21 }
0x15aa   :  { %v636_v12 = vpop.permute.xlu1 %635 }
0x15ab   :  { %1115 = vst.msk [vmem:[%s1604_s4 + $0x3] sm:$0x1] %vm311_vm5, %v636_v12  ;;  %1071 = vrot.lane.b32.xlu1 %v1070_v9, %s1324_s11 }
0x15ae   :  { %v854_v13 = vpop.permute.xlu1 %853 }
0x15af   :  { %1125 = vst.msk [vmem:[%s1604_s4 + $0x5] sm:$0x1] %vm311_vm5, %v854_v13  ;;  %1083 = vrot.lane.b32.xlu1 %v1048_v59, %s1325_s24 }
0x1617   :  { %v1078_v14 = vpop.permute.xlu0 %1077 }
0x1618   :  { %1081 = vst.msk [vmem:[#allocation3] sm:$0x3] %vm22_vm3, %v1078_v14 }
0x161d   :  { %v1072_v21 = vpop.permute.xlu1 %1071 }
0x161e   :  { %1135 = vst.msk [vmem:[%s1604_s4 + $0x7] sm:$0x1] %vm311_vm5, %v1072_v21 }
0x1621   :  { %v1084_v16 = vpop.permute.xlu1 %1083 }
0x1622   :  { %1086 = vst.msk [vmem:[#allocation4] sm:$0x3] %vm22_vm3, %v1084_v16 }

</bundles_post_ra>
